<compile_context>
chip_gen: v6e
topology: v6e:2x2x1
jax: 0.10.0
libtpu: 0.0.40
codegen_flags: <defaults>
</compile_context>

<pallas_src>
import functools

import jax
import jax.numpy as jnp
from jax import lax
from jax.experimental import pallas as pl
from jax.experimental.pallas import tpu as pltpu


def _round_up(x, m):
    return (x + m - 1) // m * m


def decoder_kernel(
    # inputs (whole arrays resident in VMEM; single invocation, no grid)
    lens_ref,       # (B, 1)      int32  decode lengths (sorted descending)
    enc_ref,        # (B, Pp, E)  f32    encoder features, pixel axis zero-padded to Pp
    att1_ref,       # (B, Pp, A)  f32    hoisted encoder_att(enc) (time-invariant)
    emb_ref,        # (T, B, Emb) bf16   time-major token embeddings
    h0_ref,         # (B, D)      f32    init_hidden_state h (hoisted to glue)
    c0_ref,         # (B, D)      f32    init_hidden_state c (hoisted to glue)
    w_dec_att_ref,  # (D, A)      bf16
    b_dec_att_ref,  # (1, A)      f32
    w_full_ref,     # (1, A)      f32    full_att weight (row vector)
    b_full_ref,     # (1, 1)      f32
    w_fbeta_ref,    # (D, E)      bf16
    b_fbeta_ref,    # (1, E)      f32
    wg_emb_ref,     # (4, Emb, D) bf16   LSTM input->gate weights (embedding stream), gates [i,f,g,o]
    wg_awe_ref,     # (4, E, D)   bf16   LSTM input->gate weights (attention stream)
    wg_h_ref,       # (4, D, D)   bf16   LSTM hidden->gate weights
    bg_ref,         # (4, 1, D)   f32    combined LSTM gate biases (b_ih + b_hh)
    w_fc_ref,       # (D, Vp)     bf16   vocab projection (padded to Vp lanes)
    b_fc_ref,       # (1, Vp)     f32
    # outputs
    preds_ref,      # (T, B, Vp)  f32
    alphas_ref,     # (T, B, Pp)  f32
    *,
    num_pixels,     # static: real (unpadded) number of pixels P
):
    T = preds_ref.shape[0]
    enc = enc_ref[...]                                    # (B, Pp, E) f32
    att1 = att1_ref[...]                                  # (B, Pp, A) f32
    lens = lens_ref[...]                                  # (B, 1) int32
    _, Pp, _ = enc.shape

    w_dec_att = w_dec_att_ref[...]
    b_dec_att = b_dec_att_ref[...]
    w_full = w_full_ref[...]
    b_full = b_full_ref[...]
    w_fbeta = w_fbeta_ref[...]
    b_fbeta = b_fbeta_ref[...]
    w_fc = w_fc_ref[...]
    b_fc = b_fc_ref[...]
    # hoist per-gate weight loads out of the time loop (static leading-index selects)
    wg_emb = [wg_emb_ref[g] for g in range(4)]
    wg_awe = [wg_awe_ref[g] for g in range(4)]
    wg_h = [wg_h_ref[g] for g in range(4)]
    bg = [bg_ref[g] for g in range(4)]

    # padded pixel positions get very negative scores so softmax assigns them 0 weight
    pix_valid = lax.broadcasted_iota(jnp.int32, (1, Pp), 1) < num_pixels   # (1, Pp)

    def step(t, carry):
        h, c = carry                                       # (B, D) f32 each
        h_b = h.astype(jnp.bfloat16)

        # ---- Attention -----------------------------------------------------
        att2 = (
            jnp.dot(h_b, w_dec_att, preferred_element_type=jnp.float32) + b_dec_att
        )                                                  # (B, A)
        att = jnp.maximum(att1 + att2[:, None, :], 0.0)    # (B, Pp, A)
        e = jnp.sum(att * w_full, axis=-1) + b_full        # (B, Pp)
        e = jnp.where(pix_valid, e, -1e30)
        m = jnp.max(e, axis=1, keepdims=True)
        p = jnp.exp(e - m)
        denom = jnp.sum(p, axis=1, keepdims=True)
        alpha = p * pl.reciprocal(denom, approx=True)      # (B, Pp); 0 at padded pixels

        # attention-weighted encoding: VPU multiply + sublane reduce (no M=1 matmuls)
        awe = jnp.sum(alpha[:, :, None] * enc, axis=1)     # (B, E) f32

        # ---- gate = sigmoid(f_beta(h)) ---------------------------------------
        gate = jax.nn.sigmoid(
            jnp.dot(h_b, w_fbeta, preferred_element_type=jnp.float32) + b_fbeta
        )                                                  # (B, E)
        awe = gate * awe

        # ---- LSTMCell (per-gate matmuls: no concat, no sub-tile lane slices) --
        emb_t = emb_ref[t]                                 # (B, Emb) bf16
        awe_b = awe.astype(jnp.bfloat16)

        def gate_pre(g):
            return (
                jnp.dot(emb_t, wg_emb[g], preferred_element_type=jnp.float32)
                + jnp.dot(awe_b, wg_awe[g], preferred_element_type=jnp.float32)
                + jnp.dot(h_b, wg_h[g], preferred_element_type=jnp.float32)
                + bg[g]
            )                                              # (B, D) f32

        i_g = jax.nn.sigmoid(gate_pre(0))
        f_g = jax.nn.sigmoid(gate_pre(1))
        g_g = jnp.tanh(gate_pre(2))
        o_g = jax.nn.sigmoid(gate_pre(3))
        c_new = f_g * c + i_g * g_g
        h_new = o_g * jnp.tanh(c_new)

        # ---- vocab projection --------------------------------------------------
        # TODO(synk): nn.Dropout(p=0.5) is stochastic in training mode; identity here (eval).
        preds = (
            jnp.dot(h_new.astype(jnp.bfloat16), w_fc, preferred_element_type=jnp.float32)
            + b_fc
        )                                                  # (B, Vp)

        # ---- batch_size_t masking (captions sorted descending by length) ------
        active = lens > t                                  # (B, 1) bool
        preds_ref[t] = jnp.where(active, preds, 0.0)
        alphas_ref[t] = jnp.where(active, alpha, 0.0)
        h_out = jnp.where(active, h_new, h)
        c_out = jnp.where(active, c_new, c)
        return h_out, c_out

    lax.fori_loop(0, T, step, (h0_ref[...], c0_ref[...]))


def init_params(key, vocab_size, embed_dim, encoder_dim, decoder_dim, attention_dim):
    """Deterministic synthetic parameters. All Linear weights stored as (in, out)."""
    ks = jax.random.split(key, 19)

    def u(k, shape, scale=0.1):
        return jax.random.uniform(k, shape, jnp.float32, -scale, scale)

    return dict(
        embedding=u(ks[0], (vocab_size, embed_dim)),
        w_init_h=u(ks[1], (encoder_dim, decoder_dim)),
        b_init_h=u(ks[2], (1, decoder_dim)),
        w_init_c=u(ks[3], (encoder_dim, decoder_dim)),
        b_init_c=u(ks[4], (1, decoder_dim)),
        w_enc_att=u(ks[5], (encoder_dim, attention_dim)),
        b_enc_att=u(ks[6], (1, attention_dim)),
        w_dec_att=u(ks[7], (decoder_dim, attention_dim)),
        b_dec_att=u(ks[8], (1, attention_dim)),
        w_full=u(ks[9], (1, attention_dim)),      # full_att: attention_dim -> 1
        b_full=u(ks[10], (1, 1)),
        w_fbeta=u(ks[11], (decoder_dim, encoder_dim)),
        b_fbeta=u(ks[12], (1, encoder_dim)),
        w_ih=u(ks[13], (embed_dim + encoder_dim, 4 * decoder_dim)),  # gates [i,f,g,o]
        b_ih=u(ks[14], (1, 4 * decoder_dim)),
        w_hh=u(ks[15], (decoder_dim, 4 * decoder_dim)),
        b_hh=u(ks[16], (1, 4 * decoder_dim)),
        w_fc=u(ks[17], (decoder_dim, vocab_size)),
        b_fc=jnp.zeros((1, vocab_size), jnp.float32),
    )


def decoder_with_attention_forward(params, encoder_out, encoded_captions, caption_lengths):
    """Mirrors DecoderWithAttention.forward.

    Returns (predictions, sorted_encoded_captions, decode_lengths, alphas, sort_ind).
    """
    B = encoder_out.shape[0]
    E = encoder_out.shape[-1]
    enc = encoder_out.reshape(B, -1, E).astype(jnp.float32)   # (B, P, E)
    P = enc.shape[1]

    # --- glue: sort by caption length (descending), embedding lookup ------------
    lens = caption_lengths[:, 0]
    sort_ind = jnp.argsort(-lens)
    lens_sorted = lens[sort_ind]
    enc = enc[sort_ind]
    caps_sorted = encoded_captions[sort_ind]
    emb = params["embedding"][caps_sorted]                    # (B, Lcap, Emb)
    decode_lengths = lens_sorted - 1
    # NOTE: host-side max (same as the PyTorch reference); do not wrap this fn in jax.jit.
    T = int(jnp.max(decode_lengths))

    D = params["w_init_h"].shape[1]
    V = params["w_fc"].shape[1]
    Emb = emb.shape[-1]

    # --- lane-dense padding of the pixel and vocab axes --------------------------
    Pp = _round_up(P, 128)
    Vp = _round_up(V, 128)
    enc_p = jnp.pad(enc, ((0, 0), (0, Pp - P), (0, 0)))       # (B, Pp, E)
    w_fc_p = jnp.pad(params["w_fc"], ((0, 0), (0, Vp - V)))   # (D, Vp)
    b_fc_p = jnp.pad(params["b_fc"], ((0, 0), (0, Vp - V)))   # (1, Vp)

    # --- hoisted time-invariant work ---------------------------------------------
    # encoder attention projection (was recomputed every decode step)
    att1 = (
        jnp.einsum("bpe,ea->bpa", enc_p, params["w_enc_att"]) + params["b_enc_att"]
    ).astype(jnp.float32)                                     # (B, Pp, A)
    # init_hidden_state: mean over the *real* pixels only
    mean_enc = jnp.mean(enc, axis=1)                          # (B, E)
    h0 = (mean_enc @ params["w_init_h"] + params["b_init_h"]).astype(jnp.float32)
    c0 = (mean_enc @ params["w_init_c"] + params["b_init_c"]).astype(jnp.float32)

    # --- pre-split LSTM weights per gate / per input stream (gate order [i,f,g,o]) -
    w_ih, w_hh = params["w_ih"], params["w_hh"]
    b_gates = params["b_ih"] + params["b_hh"]                                     # (1, 4D)
    wg_emb = jnp.stack([w_ih[:Emb, g * D:(g + 1) * D] for g in range(4)], 0)      # (4, Emb, D)
    wg_awe = jnp.stack([w_ih[Emb:, g * D:(g + 1) * D] for g in range(4)], 0)      # (4, E, D)
    wg_h = jnp.stack([w_hh[:, g * D:(g + 1) * D] for g in range(4)], 0)           # (4, D, D)
    bg = jnp.stack([b_gates[:, g * D:(g + 1) * D] for g in range(4)], 0)          # (4, 1, D)

    # time-major embeddings for the decoded steps only
    emb_tm = jnp.transpose(emb, (1, 0, 2))[:T].astype(jnp.bfloat16)   # (T, B, Emb)
    dl = decode_lengths.astype(jnp.int32).reshape(B, 1)

    bf16 = lambda x: x.astype(jnp.bfloat16)
    vmem = pl.BlockSpec(memory_space=pltpu.MemorySpace.VMEM)
    kernel = functools.partial(decoder_kernel, num_pixels=P)

    preds_tm, alphas_tm = pl.pallas_call(
        kernel,
        out_shape=(
            jax.ShapeDtypeStruct((T, B, Vp), jnp.float32),
            jax.ShapeDtypeStruct((T, B, Pp), jnp.float32),
        ),
        in_specs=[vmem] * 18,
        out_specs=(vmem, vmem),
    )(
        dl, enc_p, att1, emb_tm, h0, c0,
        bf16(params["w_dec_att"]), params["b_dec_att"],
        params["w_full"], params["b_full"],
        bf16(params["w_fbeta"]), params["b_fbeta"],
        bf16(wg_emb), bf16(wg_awe), bf16(wg_h), bg,
        bf16(w_fc_p), b_fc_p,
    )

    predictions = jnp.transpose(preds_tm, (1, 0, 2))[:, :, :V]   # (B, T, V)
    alphas = jnp.transpose(alphas_tm, (1, 0, 2))[:, :, :P]       # (B, T, P)
    return predictions, caps_sorted, decode_lengths, alphas, sort_ind


if __name__ == "__main__":
    key = jax.random.PRNGKey(0)
    k_param, k_enc, k_cap, k_len = jax.random.split(key, 4)

    # small shapes consistent with the module
    B = 2                 # batch
    HW = 4                # enc_image_size  -> num_pixels = 16
    E = 32                # encoder_dim
    A = 32                # attention_dim
    EMB = 16              # embed_dim
    D = 32                # decoder_dim
    V = 64                # vocab_size
    LCAP = 8              # max caption length

    params = init_params(k_param, V, EMB, E, D, A)

    encoder_out = jax.random.normal(k_enc, (B, HW, HW, E), jnp.float32)
    encoded_captions = jax.random.randint(k_cap, (B, LCAP), 0, V)
    caption_lengths = jax.random.randint(k_len, (B, 1), 3, LCAP + 1)

    preds, caps_sorted, decode_lengths, alphas, sort_ind = decoder_with_attention_forward(
        params, encoder_out, encoded_captions, caption_lengths
    )
    jax.block_until_ready((preds, alphas, caps_sorted, decode_lengths, sort_ind))
    print("KERNEL_OK")
</pallas_src>

<mosaic_0001>
module attributes {stable_mosaic.version = 11 : i64} {
  func.func @decoder_kernel(%arg0: memref<2x1xi32, #tpu.memory_space<vmem>>, %arg1: memref<2x128x32xf32, #tpu.memory_space<vmem>>, %arg2: memref<2x128x32xf32, #tpu.memory_space<vmem>>, %arg3: memref<5x2x16xbf16, #tpu.memory_space<vmem>>, %arg4: memref<2x32xf32, #tpu.memory_space<vmem>>, %arg5: memref<2x32xf32, #tpu.memory_space<vmem>>, %arg6: memref<32x32xbf16, #tpu.memory_space<vmem>>, %arg7: memref<1x32xf32, #tpu.memory_space<vmem>>, %arg8: memref<1x32xf32, #tpu.memory_space<vmem>>, %arg9: memref<1x1xf32, #tpu.memory_space<vmem>>, %arg10: memref<32x32xbf16, #tpu.memory_space<vmem>>, %arg11: memref<1x32xf32, #tpu.memory_space<vmem>>, %arg12: memref<4x16x32xbf16, #tpu.memory_space<vmem>>, %arg13: memref<4x32x32xbf16, #tpu.memory_space<vmem>>, %arg14: memref<4x32x32xbf16, #tpu.memory_space<vmem>>, %arg15: memref<4x1x32xf32, #tpu.memory_space<vmem>>, %arg16: memref<32x128xbf16, #tpu.memory_space<vmem>>, %arg17: memref<1x128xf32, #tpu.memory_space<vmem>>, %arg18: memref<5x2x128xf32, #tpu.memory_space<vmem>>, %arg19: memref<5x2x128xf32, #tpu.memory_space<vmem>>) attributes {dimension_semantics = [], scalar_prefetch = 0 : i64, scratch_operands = 0 : i64, tpu.core_type = #tpu.core_type<tc>} {
    %c0 = arith.constant 0 : index
    %c0_0 = arith.constant 0 : index
    %c0_1 = arith.constant 0 : index
    %0 = vector.load %arg1[%c0, %c0_0, %c0_1] : memref<2x128x32xf32, #tpu.memory_space<vmem>>, vector<2x128x32xf32>
    %c0_2 = arith.constant 0 : index
    %c0_3 = arith.constant 0 : index
    %c0_4 = arith.constant 0 : index
    %1 = vector.load %arg2[%c0_2, %c0_3, %c0_4] : memref<2x128x32xf32, #tpu.memory_space<vmem>>, vector<2x128x32xf32>
    %c0_5 = arith.constant 0 : index
    %c0_6 = arith.constant 0 : index
    %2 = vector.load %arg0[%c0_5, %c0_6] : memref<2x1xi32, #tpu.memory_space<vmem>>, vector<2x1xi32>
    %c0_7 = arith.constant 0 : index
    %c0_8 = arith.constant 0 : index
    %3 = vector.load %arg6[%c0_7, %c0_8] : memref<32x32xbf16, #tpu.memory_space<vmem>>, vector<32x32xbf16>
    %c0_9 = arith.constant 0 : index
    %c0_10 = arith.constant 0 : index
    %4 = vector.load %arg7[%c0_9, %c0_10] : memref<1x32xf32, #tpu.memory_space<vmem>>, vector<1x32xf32>
    %c0_11 = arith.constant 0 : index
    %c0_12 = arith.constant 0 : index
    %5 = vector.load %arg8[%c0_11, %c0_12] : memref<1x32xf32, #tpu.memory_space<vmem>>, vector<1x32xf32>
    %c0_13 = arith.constant 0 : index
    %c0_14 = arith.constant 0 : index
    %6 = vector.load %arg9[%c0_13, %c0_14] : memref<1x1xf32, #tpu.memory_space<vmem>>, vector<1x1xf32>
    %c0_15 = arith.constant 0 : index
    %c0_16 = arith.constant 0 : index
    %7 = vector.load %arg10[%c0_15, %c0_16] : memref<32x32xbf16, #tpu.memory_space<vmem>>, vector<32x32xbf16>
    %c0_17 = arith.constant 0 : index
    %c0_18 = arith.constant 0 : index
    %8 = vector.load %arg11[%c0_17, %c0_18] : memref<1x32xf32, #tpu.memory_space<vmem>>, vector<1x32xf32>
    %c0_19 = arith.constant 0 : index
    %c0_20 = arith.constant 0 : index
    %9 = vector.load %arg16[%c0_19, %c0_20] : memref<32x128xbf16, #tpu.memory_space<vmem>>, vector<32x128xbf16>
    %c0_21 = arith.constant 0 : index
    %c0_22 = arith.constant 0 : index
    %10 = vector.load %arg17[%c0_21, %c0_22] : memref<1x128xf32, #tpu.memory_space<vmem>>, vector<1x128xf32>
    %c0_23 = arith.constant 0 : index
    %c0_24 = arith.constant 0 : index
    %c0_25 = arith.constant 0 : index
    %11 = vector.load %arg12[%c0_23, %c0_24, %c0_25] : memref<4x16x32xbf16, #tpu.memory_space<vmem>>, vector<1x16x32xbf16>
    %12 = vector.shape_cast %11 : vector<1x16x32xbf16> to vector<16x32xbf16>
    %c1 = arith.constant 1 : index
    %c0_26 = arith.constant 0 : index
    %c0_27 = arith.constant 0 : index
    %13 = vector.load %arg12[%c1, %c0_26, %c0_27] : memref<4x16x32xbf16, #tpu.memory_space<vmem>>, vector<1x16x32xbf16>
    %14 = vector.shape_cast %13 : vector<1x16x32xbf16> to vector<16x32xbf16>
    %c2 = arith.constant 2 : index
    %c0_28 = arith.constant 0 : index
    %c0_29 = arith.constant 0 : index
    %15 = vector.load %arg12[%c2, %c0_28, %c0_29] : memref<4x16x32xbf16, #tpu.memory_space<vmem>>, vector<1x16x32xbf16>
    %16 = vector.shape_cast %15 : vector<1x16x32xbf16> to vector<16x32xbf16>
    %c3 = arith.constant 3 : index
    %c0_30 = arith.constant 0 : index
    %c0_31 = arith.constant 0 : index
    %17 = vector.load %arg12[%c3, %c0_30, %c0_31] : memref<4x16x32xbf16, #tpu.memory_space<vmem>>, vector<1x16x32xbf16>
    %18 = vector.shape_cast %17 : vector<1x16x32xbf16> to vector<16x32xbf16>
    %c0_32 = arith.constant 0 : index
    %c0_33 = arith.constant 0 : index
    %c0_34 = arith.constant 0 : index
    %19 = vector.load %arg13[%c0_32, %c0_33, %c0_34] : memref<4x32x32xbf16, #tpu.memory_space<vmem>>, vector<1x32x32xbf16>
    %20 = vector.shape_cast %19 : vector<1x32x32xbf16> to vector<32x32xbf16>
    %c1_35 = arith.constant 1 : index
    %c0_36 = arith.constant 0 : index
    %c0_37 = arith.constant 0 : index
    %21 = vector.load %arg13[%c1_35, %c0_36, %c0_37] : memref<4x32x32xbf16, #tpu.memory_space<vmem>>, vector<1x32x32xbf16>
    %22 = vector.shape_cast %21 : vector<1x32x32xbf16> to vector<32x32xbf16>
    %c2_38 = arith.constant 2 : index
    %c0_39 = arith.constant 0 : index
    %c0_40 = arith.constant 0 : index
    %23 = vector.load %arg13[%c2_38, %c0_39, %c0_40] : memref<4x32x32xbf16, #tpu.memory_space<vmem>>, vector<1x32x32xbf16>
    %24 = vector.shape_cast %23 : vector<1x32x32xbf16> to vector<32x32xbf16>
    %c3_41 = arith.constant 3 : index
    %c0_42 = arith.constant 0 : index
    %c0_43 = arith.constant 0 : index
    %25 = vector.load %arg13[%c3_41, %c0_42, %c0_43] : memref<4x32x32xbf16, #tpu.memory_space<vmem>>, vector<1x32x32xbf16>
    %26 = vector.shape_cast %25 : vector<1x32x32xbf16> to vector<32x32xbf16>
    %c0_44 = arith.constant 0 : index
    %c0_45 = arith.constant 0 : index
    %c0_46 = arith.constant 0 : index
    %27 = vector.load %arg14[%c0_44, %c0_45, %c0_46] : memref<4x32x32xbf16, #tpu.memory_space<vmem>>, vector<1x32x32xbf16>
    %28 = vector.shape_cast %27 : vector<1x32x32xbf16> to vector<32x32xbf16>
    %c1_47 = arith.constant 1 : index
    %c0_48 = arith.constant 0 : index
    %c0_49 = arith.constant 0 : index
    %29 = vector.load %arg14[%c1_47, %c0_48, %c0_49] : memref<4x32x32xbf16, #tpu.memory_space<vmem>>, vector<1x32x32xbf16>
    %30 = vector.shape_cast %29 : vector<1x32x32xbf16> to vector<32x32xbf16>
    %c2_50 = arith.constant 2 : index
    %c0_51 = arith.constant 0 : index
    %c0_52 = arith.constant 0 : index
    %31 = vector.load %arg14[%c2_50, %c0_51, %c0_52] : memref<4x32x32xbf16, #tpu.memory_space<vmem>>, vector<1x32x32xbf16>
    %32 = vector.shape_cast %31 : vector<1x32x32xbf16> to vector<32x32xbf16>
    %c3_53 = arith.constant 3 : index
    %c0_54 = arith.constant 0 : index
    %c0_55 = arith.constant 0 : index
    %33 = vector.load %arg14[%c3_53, %c0_54, %c0_55] : memref<4x32x32xbf16, #tpu.memory_space<vmem>>, vector<1x32x32xbf16>
    %34 = vector.shape_cast %33 : vector<1x32x32xbf16> to vector<32x32xbf16>
    %c0_56 = arith.constant 0 : index
    %c0_57 = arith.constant 0 : index
    %c0_58 = arith.constant 0 : index
    %35 = vector.load %arg15[%c0_56, %c0_57, %c0_58] : memref<4x1x32xf32, #tpu.memory_space<vmem>>, vector<1x1x32xf32>
    %36 = vector.shape_cast %35 : vector<1x1x32xf32> to vector<1x32xf32>
    %c1_59 = arith.constant 1 : index
    %c0_60 = arith.constant 0 : index
    %c0_61 = arith.constant 0 : index
    %37 = vector.load %arg15[%c1_59, %c0_60, %c0_61] : memref<4x1x32xf32, #tpu.memory_space<vmem>>, vector<1x1x32xf32>
    %38 = vector.shape_cast %37 : vector<1x1x32xf32> to vector<1x32xf32>
    %c2_62 = arith.constant 2 : index
    %c0_63 = arith.constant 0 : index
    %c0_64 = arith.constant 0 : index
    %39 = vector.load %arg15[%c2_62, %c0_63, %c0_64] : memref<4x1x32xf32, #tpu.memory_space<vmem>>, vector<1x1x32xf32>
    %40 = vector.shape_cast %39 : vector<1x1x32xf32> to vector<1x32xf32>
    %c3_65 = arith.constant 3 : index
    %c0_66 = arith.constant 0 : index
    %c0_67 = arith.constant 0 : index
    %41 = vector.load %arg15[%c3_65, %c0_66, %c0_67] : memref<4x1x32xf32, #tpu.memory_space<vmem>>, vector<1x1x32xf32>
    %42 = vector.shape_cast %41 : vector<1x1x32xf32> to vector<1x32xf32>
    %43 = tpu.iota {dimensions = array<i32: 1>} : vector<1x128xi32>
    %c16_i32 = arith.constant 16 : i32
    %44 = vector.broadcast %c16_i32 : i32 to vector<1x128xi32>
    %45 = arith.cmpi slt, %43, %44 : vector<1x128xi32>
    %c0_68 = arith.constant 0 : index
    %c0_69 = arith.constant 0 : index
    %46 = vector.load %arg4[%c0_68, %c0_69] : memref<2x32xf32, #tpu.memory_space<vmem>>, vector<2x32xf32>
    %c0_70 = arith.constant 0 : index
    %c0_71 = arith.constant 0 : index
    %47 = vector.load %arg5[%c0_70, %c0_71] : memref<2x32xf32, #tpu.memory_space<vmem>>, vector<2x32xf32>
    %c0_i32 = arith.constant 0 : i32
    %c5_i32 = arith.constant 5 : i32
    %48 = arith.addi %c0_i32, %c5_i32 : i32
    %c1_i32 = arith.constant 1 : i32
    %49:2 = scf.for %arg20 = %c0_i32 to %48 step %c1_i32 iter_args(%arg21 = %46, %arg22 = %47) -> (vector<2x32xf32>, vector<2x32xf32>)  : i32 {
      %50 = arith.truncf %arg21 : vector<2x32xf32> to vector<2x32xbf16>
      %cst = arith.constant dense<0.000000e+00> : vector<2x32xf32>
      %51 = tpu.matmul %50, %3, %cst {dimension_numbers = #tpu.dot_dimension_numbers<[1], [0], [0], [1], [0, 0, 1, 1], [], []>} : vector<2x32xbf16>, vector<32x32xbf16>, vector<2x32xf32> -> vector<2x32xf32>
      %52 = vector.broadcast %4 : vector<1x32xf32> to vector<2x32xf32>
      %53 = arith.addf %51, %52 : vector<2x32xf32>
      %54 = vector.shape_cast %53 : vector<2x32xf32> to vector<2x1x32xf32>
      %55 = vector.broadcast %54 : vector<2x1x32xf32> to vector<2x128x32xf32>
      %56 = arith.addf %1, %55 : vector<2x128x32xf32>
      %cst_73 = arith.constant 0.000000e+00 : f32
      %57 = vector.broadcast %cst_73 : f32 to vector<2x128x32xf32>
      %58 = arith.maximumf %56, %57 : vector<2x128x32xf32>
      %59 = vector.shape_cast %5 : vector<1x32xf32> to vector<1x1x32xf32>
      %60 = vector.broadcast %59 : vector<1x1x32xf32> to vector<2x128x32xf32>
      %61 = arith.mulf %58, %60 : vector<2x128x32xf32>
      %cst_74 = arith.constant dense<0.000000e+00> : vector<2x128xf32>
      %62 = vector.multi_reduction <add>, %61, %cst_74 [2] : vector<2x128x32xf32> to vector<2x128xf32>
      %63 = vector.broadcast %6 : vector<1x1xf32> to vector<2x128xf32>
      %64 = arith.addf %62, %63 : vector<2x128xf32>
      %cst_75 = arith.constant -1.000000e+30 : f32
      %65 = vector.shape_cast %45 : vector<1x128xi1> to vector<1x128xi1>
      %66 = vector.broadcast %65 : vector<1x128xi1> to vector<2x128xi1>
      %67 = vector.broadcast %cst_75 : f32 to vector<2x128xf32>
      %68 = arith.select %66, %64, %67 : vector<2x128xi1>, vector<2x128xf32>
      %cst_76 = arith.constant dense<0xFF800000> : vector<2xf32>
      %69 = vector.multi_reduction <maximumf>, %68, %cst_76 [1] : vector<2x128xf32> to vector<2xf32>
      %70 = vector.shape_cast %69 : vector<2xf32> to vector<2x1xf32>
      %71 = vector.broadcast %70 : vector<2x1xf32> to vector<2x128xf32>
      %72 = arith.subf %68, %71 : vector<2x128xf32>
      %73 = math.exp %72 : vector<2x128xf32>
      %cst_77 = arith.constant dense<0.000000e+00> : vector<2xf32>
      %74 = vector.multi_reduction <add>, %73, %cst_77 [1] : vector<2x128xf32> to vector<2xf32>
      %75 = vector.shape_cast %74 : vector<2xf32> to vector<2x1xf32>
      %76 = tpu.reciprocal %75 {approx = true} : vector<2x1xf32> -> vector<2x1xf32>
      %77 = vector.broadcast %76 : vector<2x1xf32> to vector<2x128xf32>
      %78 = arith.mulf %73, %77 : vector<2x128xf32>
      %79 = vector.shape_cast %78 : vector<2x128xf32> to vector<2x128x1xf32>
      %80 = vector.broadcast %79 : vector<2x128x1xf32> to vector<2x128x32xf32>
      %81 = arith.mulf %80, %0 : vector<2x128x32xf32>
      %cst_78 = arith.constant dense<0.000000e+00> : vector<2x32xf32>
      %82 = vector.multi_reduction <add>, %81, %cst_78 [1] : vector<2x128x32xf32> to vector<2x32xf32>
      %cst_79 = arith.constant dense<0.000000e+00> : vector<2x32xf32>
      %83 = tpu.matmul %50, %7, %cst_79 {dimension_numbers = #tpu.dot_dimension_numbers<[1], [0], [0], [1], [0, 0, 1, 1], [], []>} : vector<2x32xbf16>, vector<32x32xbf16>, vector<2x32xf32> -> vector<2x32xf32>
      %84 = vector.broadcast %8 : vector<1x32xf32> to vector<2x32xf32>
      %85 = arith.addf %83, %84 : vector<2x32xf32>
      %86 = arith.negf %85 : vector<2x32xf32>
      %87 = math.exp %86 : vector<2x32xf32>
      %cst_80 = arith.constant 1.000000e+00 : f32
      %88 = vector.broadcast %cst_80 : f32 to vector<2x32xf32>
      %89 = arith.addf %88, %87 : vector<2x32xf32>
      %90 = arith.divf %88, %89 : vector<2x32xf32>
      %91 = arith.mulf %90, %82 : vector<2x32xf32>
      %92 = arith.index_cast %arg20 : i32 to index
      %c0_81 = arith.constant 0 : index
      %c0_82 = arith.constant 0 : index
      %93 = vector.load %arg3[%92, %c0_81, %c0_82] : memref<5x2x16xbf16, #tpu.memory_space<vmem>>, vector<1x2x16xbf16>
      %94 = vector.shape_cast %93 : vector<1x2x16xbf16> to vector<2x16xbf16>
      %95 = arith.truncf %91 : vector<2x32xf32> to vector<2x32xbf16>
      %cst_83 = arith.constant dense<0.000000e+00> : vector<2x32xf32>
      %96 = tpu.matmul %94, %12, %cst_83 {dimension_numbers = #tpu.dot_dimension_numbers<[1], [0], [0], [1], [0, 0, 1, 1], [], []>} : vector<2x16xbf16>, vector<16x32xbf16>, vector<2x32xf32> -> vector<2x32xf32>
      %cst_84 = arith.constant dense<0.000000e+00> : vector<2x32xf32>
      %97 = tpu.matmul %95, %20, %cst_84 {dimension_numbers = #tpu.dot_dimension_numbers<[1], [0], [0], [1], [0, 0, 1, 1], [], []>} : vector<2x32xbf16>, vector<32x32xbf16>, vector<2x32xf32> -> vector<2x32xf32>
      %98 = arith.addf %96, %97 : vector<2x32xf32>
      %cst_85 = arith.constant dense<0.000000e+00> : vector<2x32xf32>
      %99 = tpu.matmul %50, %28, %cst_85 {dimension_numbers = #tpu.dot_dimension_numbers<[1], [0], [0], [1], [0, 0, 1, 1], [], []>} : vector<2x32xbf16>, vector<32x32xbf16>, vector<2x32xf32> -> vector<2x32xf32>
      %100 = arith.addf %98, %99 : vector<2x32xf32>
      %101 = vector.broadcast %36 : vector<1x32xf32> to vector<2x32xf32>
      %102 = arith.addf %100, %101 : vector<2x32xf32>
      %103 = arith.negf %102 : vector<2x32xf32>
      %104 = math.exp %103 : vector<2x32xf32>
      %cst_86 = arith.constant 1.000000e+00 : f32
      %105 = vector.broadcast %cst_86 : f32 to vector<2x32xf32>
      %106 = arith.addf %105, %104 : vector<2x32xf32>
      %107 = arith.divf %105, %106 : vector<2x32xf32>
      %cst_87 = arith.constant dense<0.000000e+00> : vector<2x32xf32>
      %108 = tpu.matmul %94, %14, %cst_87 {dimension_numbers = #tpu.dot_dimension_numbers<[1], [0], [0], [1], [0, 0, 1, 1], [], []>} : vector<2x16xbf16>, vector<16x32xbf16>, vector<2x32xf32> -> vector<2x32xf32>
      %cst_88 = arith.constant dense<0.000000e+00> : vector<2x32xf32>
      %109 = tpu.matmul %95, %22, %cst_88 {dimension_numbers = #tpu.dot_dimension_numbers<[1], [0], [0], [1], [0, 0, 1, 1], [], []>} : vector<2x32xbf16>, vector<32x32xbf16>, vector<2x32xf32> -> vector<2x32xf32>
      %110 = arith.addf %108, %109 : vector<2x32xf32>
      %cst_89 = arith.constant dense<0.000000e+00> : vector<2x32xf32>
      %111 = tpu.matmul %50, %30, %cst_89 {dimension_numbers = #tpu.dot_dimension_numbers<[1], [0], [0], [1], [0, 0, 1, 1], [], []>} : vector<2x32xbf16>, vector<32x32xbf16>, vector<2x32xf32> -> vector<2x32xf32>
      %112 = arith.addf %110, %111 : vector<2x32xf32>
      %113 = vector.broadcast %38 : vector<1x32xf32> to vector<2x32xf32>
      %114 = arith.addf %112, %113 : vector<2x32xf32>
      %115 = arith.negf %114 : vector<2x32xf32>
      %116 = math.exp %115 : vector<2x32xf32>
      %cst_90 = arith.constant 1.000000e+00 : f32
      %117 = vector.broadcast %cst_90 : f32 to vector<2x32xf32>
      %118 = arith.addf %117, %116 : vector<2x32xf32>
      %119 = arith.divf %117, %118 : vector<2x32xf32>
      %cst_91 = arith.constant dense<0.000000e+00> : vector<2x32xf32>
      %120 = tpu.matmul %94, %16, %cst_91 {dimension_numbers = #tpu.dot_dimension_numbers<[1], [0], [0], [1], [0, 0, 1, 1], [], []>} : vector<2x16xbf16>, vector<16x32xbf16>, vector<2x32xf32> -> vector<2x32xf32>
      %cst_92 = arith.constant dense<0.000000e+00> : vector<2x32xf32>
      %121 = tpu.matmul %95, %24, %cst_92 {dimension_numbers = #tpu.dot_dimension_numbers<[1], [0], [0], [1], [0, 0, 1, 1], [], []>} : vector<2x32xbf16>, vector<32x32xbf16>, vector<2x32xf32> -> vector<2x32xf32>
      %122 = arith.addf %120, %121 : vector<2x32xf32>
      %cst_93 = arith.constant dense<0.000000e+00> : vector<2x32xf32>
      %123 = tpu.matmul %50, %32, %cst_93 {dimension_numbers = #tpu.dot_dimension_numbers<[1], [0], [0], [1], [0, 0, 1, 1], [], []>} : vector<2x32xbf16>, vector<32x32xbf16>, vector<2x32xf32> -> vector<2x32xf32>
      %124 = arith.addf %122, %123 : vector<2x32xf32>
      %125 = vector.broadcast %40 : vector<1x32xf32> to vector<2x32xf32>
      %126 = arith.addf %124, %125 : vector<2x32xf32>
      %127 = math.tanh %126 : vector<2x32xf32>
      %cst_94 = arith.constant dense<0.000000e+00> : vector<2x32xf32>
      %128 = tpu.matmul %94, %18, %cst_94 {dimension_numbers = #tpu.dot_dimension_numbers<[1], [0], [0], [1], [0, 0, 1, 1], [], []>} : vector<2x16xbf16>, vector<16x32xbf16>, vector<2x32xf32> -> vector<2x32xf32>
      %cst_95 = arith.constant dense<0.000000e+00> : vector<2x32xf32>
      %129 = tpu.matmul %95, %26, %cst_95 {dimension_numbers = #tpu.dot_dimension_numbers<[1], [0], [0], [1], [0, 0, 1, 1], [], []>} : vector<2x32xbf16>, vector<32x32xbf16>, vector<2x32xf32> -> vector<2x32xf32>
      %130 = arith.addf %128, %129 : vector<2x32xf32>
      %cst_96 = arith.constant dense<0.000000e+00> : vector<2x32xf32>
      %131 = tpu.matmul %50, %34, %cst_96 {dimension_numbers = #tpu.dot_dimension_numbers<[1], [0], [0], [1], [0, 0, 1, 1], [], []>} : vector<2x32xbf16>, vector<32x32xbf16>, vector<2x32xf32> -> vector<2x32xf32>
      %132 = arith.addf %130, %131 : vector<2x32xf32>
      %133 = vector.broadcast %42 : vector<1x32xf32> to vector<2x32xf32>
      %134 = arith.addf %132, %133 : vector<2x32xf32>
      %135 = arith.negf %134 : vector<2x32xf32>
      %136 = math.exp %135 : vector<2x32xf32>
      %cst_97 = arith.constant 1.000000e+00 : f32
      %137 = vector.broadcast %cst_97 : f32 to vector<2x32xf32>
      %138 = arith.addf %137, %136 : vector<2x32xf32>
      %139 = arith.divf %137, %138 : vector<2x32xf32>
      %140 = arith.mulf %119, %arg22 : vector<2x32xf32>
      %141 = arith.mulf %107, %127 : vector<2x32xf32>
      %142 = arith.addf %140, %141 : vector<2x32xf32>
      %143 = math.tanh %142 : vector<2x32xf32>
      %144 = arith.mulf %139, %143 : vector<2x32xf32>
      %145 = arith.truncf %144 : vector<2x32xf32> to vector<2x32xbf16>
      %cst_98 = arith.constant dense<0.000000e+00> : vector<2x128xf32>
      %146 = tpu.matmul %145, %9, %cst_98 {dimension_numbers = #tpu.dot_dimension_numbers<[1], [0], [0], [1], [0, 0, 1, 1], [], []>} : vector<2x32xbf16>, vector<32x128xbf16>, vector<2x128xf32> -> vector<2x128xf32>
      %147 = vector.broadcast %10 : vector<1x128xf32> to vector<2x128xf32>
      %148 = arith.addf %146, %147 : vector<2x128xf32>
      %149 = vector.broadcast %arg20 : i32 to vector<2x1xi32>
      %150 = arith.cmpi sgt, %2, %149 : vector<2x1xi32>
      %cst_99 = arith.constant 0.000000e+00 : f32
      %151 = vector.shape_cast %150 : vector<2x1xi1> to vector<2x1xi1>
      %152 = vector.broadcast %151 : vector<2x1xi1> to vector<2x128xi1>
      %153 = vector.broadcast %cst_99 : f32 to vector<2x128xf32>
      %154 = arith.select %152, %148, %153 : vector<2x128xi1>, vector<2x128xf32>
      %155 = arith.index_cast %arg20 : i32 to index
      %c0_100 = arith.constant 0 : index
      %c0_101 = arith.constant 0 : index
      %156 = vector.load %arg18[%155, %c0_100, %c0_101] : memref<5x2x128xf32, #tpu.memory_space<vmem>>, vector<1x2x128xf32>
      %157 = vector.shape_cast %156 : vector<1x2x128xf32> to vector<2x128xf32>
      %158 = vector.shape_cast %154 : vector<2x128xf32> to vector<1x2x128xf32>
      tpu.vector_store %arg18[%155, %c0_100, %c0_101], %158 {strides = array<i32>} : memref<5x2x128xf32, #tpu.memory_space<vmem>>, vector<1x2x128xf32>,
      %cst_102 = arith.constant 0.000000e+00 : f32
      %159 = vector.shape_cast %150 : vector<2x1xi1> to vector<2x1xi1>
      %160 = vector.broadcast %159 : vector<2x1xi1> to vector<2x128xi1>
      %161 = vector.broadcast %cst_102 : f32 to vector<2x128xf32>
      %162 = arith.select %160, %78, %161 : vector<2x128xi1>, vector<2x128xf32>
      %163 = arith.index_cast %arg20 : i32 to index
      %c0_103 = arith.constant 0 : index
      %c0_104 = arith.constant 0 : index
      %164 = vector.load %arg19[%163, %c0_103, %c0_104] : memref<5x2x128xf32, #tpu.memory_space<vmem>>, vector<1x2x128xf32>
      %165 = vector.shape_cast %164 : vector<1x2x128xf32> to vector<2x128xf32>
      %166 = vector.shape_cast %162 : vector<2x128xf32> to vector<1x2x128xf32>
      tpu.vector_store %arg19[%163, %c0_103, %c0_104], %166 {strides = array<i32>} : memref<5x2x128xf32, #tpu.memory_space<vmem>>, vector<1x2x128xf32>,
      %167 = vector.shape_cast %150 : vector<2x1xi1> to vector<2x1xi1>
      %168 = vector.broadcast %167 : vector<2x1xi1> to vector<2x32xi1>
      %169 = arith.select %168, %144, %arg21 : vector<2x32xi1>, vector<2x32xf32>
      %170 = vector.shape_cast %150 : vector<2x1xi1> to vector<2x1xi1>
      %171 = vector.broadcast %170 : vector<2x1xi1> to vector<2x32xi1>
      %172 = arith.select %171, %142, %arg22 : vector<2x32xi1>, vector<2x32xf32>
      scf.yield %169, %172 : vector<2x32xf32>, vector<2x32xf32>
    }
    %c5_i32_72 = arith.constant 5 : i32
    return
  }
}

</mosaic_0001>

<bundles_post_ra>
// kernel: tpu_custom_call.1
= control target key start
LH: loop header
LB: loop body
LE: loop exit
PB: predicated region body
PF: predicated region fallthrough
CT: control target
= control target key end

     0   :  { %s3617_s0 = inlined_call_operand.vmem [shape: s32[2,1], index: 0, kind: input, shape index: {}]   ;;  %s3618_s1 = inlined_call_operand.vmem [shape: f32[2,128,32], index: 1, kind: input, shape index: {}]   ;;  %s3619_s2 = inlined_call_operand.vmem [shape: f32[2,128,32], index: 2, kind: input, shape index: {}]   ;;  %s3620_s3 = inlined_call_operand.vmem [shape: bf16[5,2,16], index: 3, kind: input, shape index: {}]   ;;  %s3621_s4 = inlined_call_operand.vmem [shape: f32[2,32], index: 4, kind: input, shape index: {}]   ;;  %s3622_s5 = inlined_call_operand.vmem [shape: f32[2,32], index: 5, kind: input, shape index: {}]   ;;  %s3623_s6 = inlined_call_operand.vmem [shape: bf16[32,32], index: 6, kind: input, shape index: {}]   ;;  %s3624_s7 = inlined_call_operand.vmem [shape: f32[1,32], index: 7, kind: input, shape index: {}]   ;;  %s3625_s8 = inlined_call_operand.vmem [shape: f32[1,32], index: 8, kind: input, shape index: {}]   ;;  %s3626_s9 = inlined_call_operand.<no memory space> [shape: f32[1,1], index: 9, kind: input, shape index: {}]   ;;  %s3627_s10 = inlined_call_operand.vmem [shape: bf16[32,32], index: 10, kind: input, shape index: {}]   ;;  %s3628_s11 = inlined_call_operand.vmem [shape: f32[1,32], index: 11, kind: input, shape index: {}]   ;;  %s3629_s12 = inlined_call_operand.vmem [shape: bf16[4,16,32], index: 12, kind: input, shape index: {}]   ;;  %s3630_s13 = inlined_call_operand.vmem [shape: bf16[4,32,32], index: 13, kind: input, shape index: {}]   ;;  %s3631_s14 = inlined_call_operand.vmem [shape: bf16[4,32,32], index: 14, kind: input, shape index: {}]   ;;  %s3632_s15 = inlined_call_operand.vmem [shape: f32[4,1,32], index: 15, kind: input, shape index: {}]   ;;  %s3633_s16 = inlined_call_operand.vmem [shape: bf16[32,128], index: 16, kind: input, shape index: {}]   ;;  %s3634_s17 = inlined_call_operand.vmem [shape: f32[1,128], index: 17, kind: input, shape index: {}]   ;;  %s3635_s18 = inlined_call_operand.hbm [shape: f32[5,2,128], index: 18, kind: output, shape index: {0}]   ;;  %s3636_s19 = inlined_call_operand.hbm [shape: f32[5,2,128], index: 19, kind: output, shape index: {1}]  }
   0x1   :  { %3646 = sst [smem:[#allocation119_spill]] %s3617_s0  ;;  %v25_v0 = vstv %s3626_s9 }
   0x2   :  { %3647 = sst [smem:[#allocation120_spill]] %s3618_s1  ;;  %26 = vst [vmem:[#allocation2] sm:$0x1] %v25_v0 }
   0x3   :  { %3648 = sst [smem:[#allocation121_spill]] %s3619_s2 }
   0x4   :  { %3649 = sst [smem:[#allocation122_spill]] %s3620_s3 }
   0x5   :  { %27 = vsyncpa [#allocation4], 0 }
   0x6   :  { %28 = vsyncpa [#allocation6], 0  ;;  %s3650_s1 = sld [smem:[#allocation120_spill]]  ;;  %v3639_v3 = vlaneseq  ;;  %s3010_s22 = smov 0  }
   0x7   :  { %s3683_s9 = sld [smem:[#allocation121_spill]] }
   0x8   :  { %v2410_v10 = vand.u32 127, %v3639_v3  ;;  %s3708_s28 = sld [smem:[#allocation119_spill]] }
   0xa   :  { %vm206_vm0 = vcmp.lt.s32.totalorder %v2410_v10, 16 }
   0xc   :  { %v2372_v1 = vld [vmem:[%s3650_s1] sm:$0xff]  ;;  %v2377_v2 = vld [vmem:[%s3650_s1 + $0x8] sm:$0xff]  ;;  %v2382_v4 = vld [vmem:[%s3650_s1 + $0x10] sm:$0xff] }
   0xd   :  { %3651 = vst [vmem:[#allocation9_spill] sm:$0xff] %v2372_v1  ;;  %3652 = vst [vmem:[#allocation10_spill] sm:$0xff] %v2377_v2  ;;  %v2387_v5 = vld [vmem:[%s3650_s1 + $0x18] sm:$0xff]  ;;  %v2392_v6 = vld [vmem:[%s3650_s1 + $0x20] sm:$0xff] }
   0xe   :  { %3653 = vst [vmem:[#allocation11_spill] sm:$0xff] %v2382_v4  ;;  %3654 = vst [vmem:[#allocation12_spill] sm:$0xff] %v2387_v5  ;;  %v2397_v7 = vld [vmem:[%s3650_s1 + $0x28] sm:$0xff]  ;;  %v2402_v8 = vld [vmem:[%s3650_s1 + $0x30] sm:$0xff] }
   0xf   :  { %3655 = vst [vmem:[#allocation13_spill] sm:$0xff] %v2392_v6  ;;  %3656 = vst [vmem:[#allocation14_spill] sm:$0xff] %v2397_v7  ;;  %v2407_v9 = vld [vmem:[%s3650_s1 + $0x38] sm:$0xff]  ;;  %v2415_v11 = vld [vmem:[%s3650_s1 + $0x40] sm:$0xff] }
  0x10   :  { %3657 = vst [vmem:[#allocation15_spill] sm:$0xff] %v2402_v8  ;;  %3658 = vst [vmem:[#allocation16_spill] sm:$0xff] %v2407_v9  ;;  %v2420_v12 = vld [vmem:[%s3650_s1 + $0x48] sm:$0xff]  ;;  %v2425_v13 = vld [vmem:[%s3650_s1 + $0x50] sm:$0xff] }
  0x11   :  { %3659 = vst [vmem:[#allocation17_spill] sm:$0xff] %v2415_v11  ;;  %3660 = vst [vmem:[#allocation18_spill] sm:$0xff] %v2420_v12  ;;  %v2430_v14 = vld [vmem:[%s3650_s1 + $0x58] sm:$0xff]  ;;  %v2435_v15 = vld [vmem:[%s3650_s1 + $0x60] sm:$0xff] }
  0x12   :  { %3661 = vst [vmem:[#allocation19_spill] sm:$0xff] %v2425_v13  ;;  %3662 = vst [vmem:[#allocation20_spill] sm:$0xff] %v2430_v14  ;;  %v2440_v16 = vld [vmem:[%s3650_s1 + $0x68] sm:$0xff]  ;;  %v2446_v17 = vld [vmem:[%s3650_s1 + $0x70] sm:$0xff] }
  0x13   :  { %3663 = vst [vmem:[#allocation21_spill] sm:$0xff] %v2435_v15  ;;  %3664 = vst [vmem:[#allocation22_spill] sm:$0xff] %v2440_v16  ;;  %v2451_v18 = vld [vmem:[%s3650_s1 + $0x78] sm:$0xff]  ;;  %v2456_v19 = vld [vmem:[%s3650_s1 + $0x80] sm:$0xff] }
  0x14   :  { %3665 = vst [vmem:[#allocation23_spill] sm:$0xff] %v2446_v17  ;;  %3666 = vst [vmem:[#allocation24_spill] sm:$0xff] %v2451_v18  ;;  %v2461_v20 = vld [vmem:[%s3650_s1 + $0x88] sm:$0xff]  ;;  %v2466_v21 = vld [vmem:[%s3650_s1 + $0x90] sm:$0xff] }
  0x15   :  { %3667 = vst [vmem:[#allocation25_spill] sm:$0xff] %v2456_v19  ;;  %3668 = vst [vmem:[#allocation26_spill] sm:$0xff] %v2461_v20  ;;  %v2471_v22 = vld [vmem:[%s3650_s1 + $0x98] sm:$0xff]  ;;  %v2476_v23 = vld [vmem:[%s3650_s1 + $0xa0] sm:$0xff] }
  0x16   :  { %3669 = vst [vmem:[#allocation27_spill] sm:$0xff] %v2466_v21  ;;  %3670 = vst [vmem:[#allocation28_spill] sm:$0xff] %v2471_v22  ;;  %v2481_v24 = vld [vmem:[%s3650_s1 + $0xa8] sm:$0xff]  ;;  %v2486_v25 = vld [vmem:[%s3650_s1 + $0xb0] sm:$0xff] }
  0x17   :  { %3671 = vst [vmem:[#allocation29_spill] sm:$0xff] %v2476_v23  ;;  %3672 = vst [vmem:[#allocation30_spill] sm:$0xff] %v2481_v24  ;;  %v2491_v26 = vld [vmem:[%s3650_s1 + $0xb8] sm:$0xff]  ;;  %v2496_v27 = vld [vmem:[%s3650_s1 + $0xc0] sm:$0xff] }
  0x18   :  { %3673 = vst [vmem:[#allocation31_spill] sm:$0xff] %v2486_v25  ;;  %3674 = vst [vmem:[#allocation32_spill] sm:$0xff] %v2491_v26  ;;  %v2501_v28 = vld [vmem:[%s3650_s1 + $0xc8] sm:$0xff]  ;;  %v2506_v29 = vld [vmem:[%s3650_s1 + $0xd0] sm:$0xff] }
  0x19   :  { %3675 = vst [vmem:[#allocation33_spill] sm:$0xff] %v2496_v27  ;;  %3676 = vst [vmem:[#allocation34_spill] sm:$0xff] %v2501_v28  ;;  %v2511_v30 = vld [vmem:[%s3650_s1 + $0xd8] sm:$0xff]  ;;  %v2516_v31 = vld [vmem:[%s3650_s1 + $0xe0] sm:$0xff] }
  0x1a   :  { %3677 = vst [vmem:[#allocation35_spill] sm:$0xff] %v2506_v29  ;;  %3678 = vst [vmem:[#allocation36_spill] sm:$0xff] %v2511_v30  ;;  %v2521_v32 = vld [vmem:[%s3650_s1 + $0xe8] sm:$0xff]  ;;  %v2526_v33 = vld [vmem:[%s3650_s1 + $0xf0] sm:$0xff] }
  0x1b   :  { %3679 = vst [vmem:[#allocation37_spill] sm:$0xff] %v2516_v31  ;;  %3680 = vst [vmem:[#allocation38_spill] sm:$0xff] %v2521_v32  ;;  %v2531_v34 = vld [vmem:[%s3650_s1 + $0xf8] sm:$0xff]  ;;  %v2536_v35 = vld [vmem:[%s3683_s9] sm:$0xff] }
  0x1c   :  { %3681 = vst [vmem:[#allocation39_spill] sm:$0xff] %v2526_v33  ;;  %3682 = vst [vmem:[#allocation40_spill] sm:$0xff] %v2531_v34  ;;  %v2541_v36 = vld [vmem:[%s3683_s9 + $0x8] sm:$0xff]  ;;  %v2546_v37 = vld [vmem:[%s3683_s9 + $0x10] sm:$0xff] }
  0x1d   :  { %3684 = vst [vmem:[#allocation41_spill] sm:$0xff] %v2536_v35  ;;  %3685 = vst [vmem:[#allocation42_spill] sm:$0xff] %v2541_v36  ;;  %v2551_v38 = vld [vmem:[%s3683_s9 + $0x18] sm:$0xff]  ;;  %v2556_v39 = vld [vmem:[%s3683_s9 + $0x20] sm:$0xff] }
  0x1e   :  { %3686 = vst [vmem:[#allocation43_spill] sm:$0xff] %v2546_v37  ;;  %3687 = vst [vmem:[#allocation44_spill] sm:$0xff] %v2551_v38  ;;  %v2561_v40 = vld [vmem:[%s3683_s9 + $0x28] sm:$0xff]  ;;  %v2566_v41 = vld [vmem:[%s3683_s9 + $0x30] sm:$0xff] }
  0x1f   :  { %3688 = vst [vmem:[#allocation45_spill] sm:$0xff] %v2556_v39  ;;  %3689 = vst [vmem:[#allocation46_spill] sm:$0xff] %v2561_v40  ;;  %v2571_v42 = vld [vmem:[%s3683_s9 + $0x38] sm:$0xff]  ;;  %v2576_v43 = vld [vmem:[%s3683_s9 + $0x40] sm:$0xff] }
  0x20   :  { %3690 = vst [vmem:[#allocation47_spill] sm:$0xff] %v2566_v41  ;;  %3691 = vst [vmem:[#allocation48_spill] sm:$0xff] %v2571_v42  ;;  %v2581_v44 = vld [vmem:[%s3683_s9 + $0x48] sm:$0xff]  ;;  %v2586_v45 = vld [vmem:[%s3683_s9 + $0x50] sm:$0xff] }
  0x21   :  { %3692 = vst [vmem:[#allocation49_spill] sm:$0xff] %v2576_v43  ;;  %3693 = vst [vmem:[#allocation50_spill] sm:$0xff] %v2581_v44  ;;  %v2591_v46 = vld [vmem:[%s3683_s9 + $0x58] sm:$0xff]  ;;  %v2596_v47 = vld [vmem:[%s3683_s9 + $0x60] sm:$0xff] }
  0x22   :  { %3694 = vst [vmem:[#allocation51_spill] sm:$0xff] %v2586_v45  ;;  %3695 = vst [vmem:[#allocation52_spill] sm:$0xff] %v2591_v46  ;;  %v2601_v48 = vld [vmem:[%s3683_s9 + $0x68] sm:$0xff]  ;;  %v2606_v49 = vld [vmem:[%s3683_s9 + $0x70] sm:$0xff] }
  0x23   :  { %3696 = vst [vmem:[#allocation53_spill] sm:$0xff] %v2596_v47  ;;  %3697 = vst [vmem:[#allocation54_spill] sm:$0xff] %v2601_v48  ;;  %v2611_v50 = vld [vmem:[%s3683_s9 + $0x78] sm:$0xff]  ;;  %v2616_v51 = vld [vmem:[%s3683_s9 + $0x80] sm:$0xff] }
  0x24   :  { %3698 = vst [vmem:[#allocation55_spill] sm:$0xff] %v2606_v49  ;;  %3699 = vst [vmem:[#allocation56_spill] sm:$0xff] %v2611_v50  ;;  %v2621_v52 = vld [vmem:[%s3683_s9 + $0x88] sm:$0xff]  ;;  %v2626_v53 = vld [vmem:[%s3683_s9 + $0x90] sm:$0xff] }
  0x25   :  { %3700 = vst [vmem:[#allocation57_spill] sm:$0xff] %v2616_v51  ;;  %3701 = vst [vmem:[#allocation58_spill] sm:$0xff] %v2621_v52  ;;  %v2631_v54 = vld [vmem:[%s3683_s9 + $0x98] sm:$0xff]  ;;  %v2636_v55 = vld [vmem:[%s3683_s9 + $0xa0] sm:$0xff] }
  0x26   :  { %3702 = vst [vmem:[#allocation59_spill] sm:$0xff] %v2626_v53  ;;  %3703 = vst [vmem:[#allocation60_spill] sm:$0xff] %v2631_v54  ;;  %v2641_v56 = vld [vmem:[%s3683_s9 + $0xa8] sm:$0xff]  ;;  %v2646_v57 = vld [vmem:[%s3683_s9 + $0xb0] sm:$0xff] }
  0x27   :  { %3704 = vst [vmem:[#allocation61_spill] sm:$0xff] %v2636_v55  ;;  %v2651_v58 = vld [vmem:[%s3683_s9 + $0xb8] sm:$0xff]  ;;  %v2656_v59 = vld [vmem:[%s3683_s9 + $0xc0] sm:$0xff]  ;;  %v2661_v60 = vld [vmem:[%s3683_s9 + $0xc8] sm:$0xff] }
  0x28   :  { %v2666_v61 = vld [vmem:[%s3683_s9 + $0xd0] sm:$0xff]  ;;  %v2671_v62 = vld [vmem:[%s3683_s9 + $0xd8] sm:$0xff]  ;;  %v2676_v63 = vld [vmem:[%s3683_s9 + $0xe0] sm:$0xff] }
  0x29   :  { %v2681_v0 = vld [vmem:[%s3683_s9 + $0xe8] sm:$0xff]  ;;  %v2686_v3 = vld [vmem:[%s3683_s9 + $0xf0] sm:$0xff]  ;;  %v2691_v18 = vld [vmem:[%s3683_s9 + $0xf8] sm:$0xff] }
  0x2a   :  { %3705 = vst [vmem:[#allocation62_spill] sm:$0xff] %v2681_v0  ;;  %3706 = vst [vmem:[#allocation63_spill] sm:$0xff] %v2686_v3  ;;  %v2696_v17 = vld [vmem:[%s3708_s28] sm:$0x3]  ;;  %v2706_v15 = vld [vmem:[%s3623_s6 + $0x4] sm:$0xf] }
  0x2b   :  { %3707 = vst [vmem:[#allocation64_spill] sm:$0xff] %v2691_v18  ;;  %v2701_v16 = vld [vmem:[%s3623_s6] sm:$0xf]  ;;  %3710 = vst [vmem:[#allocation66_spill] sm:$0xff] %v2706_v15  ;;  %v2711_v14 = vld [vmem:[%s3623_s6 + $0x8] sm:$0xf] }
  0x2c   :  { %3709 = vst [vmem:[#allocation65_spill] sm:$0xff] %v2701_v16  ;;  %3711 = vst [vmem:[#allocation67_spill] sm:$0xff] %v2711_v14  ;;  %v2716_v13 = vld [vmem:[%s3623_s6 + $0xc] sm:$0xf]  ;;  %v2721_v34 = vld [vmem:[%s3624_s7] ss:$0 sm:$0xff] }
  0x2d   :  { %3712 = vst [vmem:[#allocation68_spill] sm:$0xff] %v2716_v13  ;;  %3713 = vst [vmem:[#allocation69_spill] sm:$0xff] %v2721_v34  ;;  %v2726_v12 = vld [vmem:[%s3625_s8] ss:$0 sm:$0xff]  ;;  %v2738_v32 = vld [vmem:[%s3627_s10 + $0x4] sm:$0xf] }
  0x2e   :  { %3714 = vst [vmem:[#allocation70_spill] sm:$0xff] %v2726_v12  ;;  %v2728_v33 = vld [vmem:[#allocation2] ss:$0 sm:$0xff]  ;;  %v2743_v9 = vld [vmem:[%s3627_s10 + $0x8] sm:$0xf] }
  0x2f   :  { %3715 = vst [vmem:[#allocation71_spill] sm:$0xff] %v2728_v33  ;;  %v2733_v11 = vld [vmem:[%s3627_s10] sm:$0xf]  ;;  %v2748_v31 = vld [vmem:[%s3627_s10 + $0xc] sm:$0xf] }
  0x30   :  { %v2753_v8 = vld [vmem:[%s3628_s11] ss:$0 sm:$0xff]  ;;  %v2763_v7 = vld [vmem:[%s3633_s16 + $0x4] sm:$0xf]  ;;  %v2768_v29 = vld [vmem:[%s3633_s16 + $0x8] sm:$0xf] }
  0x31   :  { %3716 = vst [vmem:[#allocation72_spill] sm:$0xff] %v2753_v8  ;;  %v2758_v30 = vld [vmem:[%s3633_s16] sm:$0xf]  ;;  %3718 = vst [vmem:[#allocation74_spill] sm:$0xff] %v2763_v7  ;;  %v2773_v6 = vld [vmem:[%s3633_s16 + $0xc] sm:$0xf] }
  0x32   :  { %3717 = vst [vmem:[#allocation73_spill] sm:$0xff] %v2758_v30  ;;  %3719 = vst [vmem:[#allocation75_spill] sm:$0xff] %v2768_v29  ;;  %v2778_v8 = vld [vmem:[%s3634_s17] ss:$0 sm:$0xff]  ;;  %v2788_v7 = vld [vmem:[%s3629_s12 + $0x4] sm:$0xf] }
  0x33   :  { %3720 = vst [vmem:[#allocation76_spill] sm:$0xff] %v2773_v6  ;;  %3721 = vst [vmem:[#allocation77_spill] sm:$0xff] %v2778_v8  ;;  %v2783_v30 = vld [vmem:[%s3629_s12] sm:$0xf]  ;;  %v2793_v29 = vld [vmem:[%s3629_s12 + $0x8] sm:$0xf] }
  0x34   :  { %3722 = vst [vmem:[#allocation78_spill] sm:$0xff] %v2793_v29  ;;  %v2798_v6 = vld [vmem:[%s3629_s12 + $0xc] sm:$0xf]  ;;  %v2803_v8 = vld [vmem:[%s3629_s12 + $0x10] sm:$0xf] }
  0x35   :  { %3723 = vst [vmem:[#allocation79_spill] sm:$0xff] %v2798_v6  ;;  %3724 = vst [vmem:[#allocation80_spill] sm:$0xff] %v2803_v8  ;;  %v2808_v28 = vld [vmem:[%s3629_s12 + $0x14] sm:$0xf]  ;;  %v2813_v5 = vld [vmem:[%s3629_s12 + $0x18] sm:$0xf] }
  0x36   :  { %3725 = vst [vmem:[#allocation81_spill] sm:$0xff] %v2808_v28  ;;  %3726 = vst [vmem:[#allocation82_spill] sm:$0xff] %v2813_v5  ;;  %v2818_v29 = vld [vmem:[%s3629_s12 + $0x1c] sm:$0xf]  ;;  %v2823_v6 = vld [vmem:[%s3630_s13] sm:$0xf] }
  0x37   :  { %3727 = vst [vmem:[#allocation83_spill] sm:$0xff] %v2818_v29  ;;  %3728 = vst [vmem:[#allocation84_spill] sm:$0xff] %v2823_v6  ;;  %v2828_v8 = vld [vmem:[%s3630_s13 + $0x4] sm:$0xf]  ;;  %v2833_v28 = vld [vmem:[%s3630_s13 + $0x8] sm:$0xf] }
  0x38   :  { %3729 = vst [vmem:[#allocation85_spill] sm:$0xff] %v2828_v8  ;;  %v2838_v5 = vld [vmem:[%s3630_s13 + $0xc] sm:$0xf]  ;;  %v2843_v29 = vld [vmem:[%s3630_s13 + $0x10] sm:$0xf] }
  0x39   :  { %3730 = vst [vmem:[#allocation86_spill] sm:$0xff] %v2843_v29  ;;  %v2848_v4 = vld [vmem:[%s3630_s13 + $0x14] sm:$0xf]  ;;  %v2853_v27 = vld [vmem:[%s3630_s13 + $0x18] sm:$0xf] }
  0x3a   :  { %3731 = vst [vmem:[#allocation87_spill] sm:$0xff] %v2848_v4  ;;  %3732 = vst [vmem:[#allocation88_spill] sm:$0xff] %v2853_v27  ;;  %v2858_v1 = vld [vmem:[%s3630_s13 + $0x1c] sm:$0xf]  ;;  %v2863_v2 = vld [vmem:[%s3630_s13 + $0x20] sm:$0xf] }
  0x3b   :  { %3733 = vst [vmem:[#allocation89_spill] sm:$0xff] %v2863_v2  ;;  %v2868_v26 = vld [vmem:[%s3630_s13 + $0x24] sm:$0xf]  ;;  %v2873_v25 = vld [vmem:[%s3630_s13 + $0x28] sm:$0xf] }
  0x3c   :  { %3734 = vst [vmem:[#allocation90_spill] sm:$0xff] %v2868_v26  ;;  %3735 = vst [vmem:[#allocation91_spill] sm:$0xff] %v2873_v25  ;;  %v2878_v24 = vld [vmem:[%s3630_s13 + $0x2c] sm:$0xf]  ;;  %v2883_v23 = vld [vmem:[%s3630_s13 + $0x30] sm:$0xf] }
  0x3d   :  { %3736 = vst [vmem:[#allocation92_spill] sm:$0xff] %v2878_v24  ;;  %3737 = vst [vmem:[#allocation93_spill] sm:$0xff] %v2883_v23  ;;  %v2888_v2 = vld [vmem:[%s3630_s13 + $0x34] sm:$0xf]  ;;  %v2893_v26 = vld [vmem:[%s3630_s13 + $0x38] sm:$0xf] }
  0x3e   :  { %3738 = vst [vmem:[#allocation94_spill] sm:$0xff] %v2888_v2  ;;  %3739 = vst [vmem:[#allocation95_spill] sm:$0xff] %v2893_v26  ;;  %v2898_v25 = vld [vmem:[%s3630_s13 + $0x3c] sm:$0xf]  ;;  %v2903_v24 = vld [vmem:[%s3631_s14] sm:$0xf] }
  0x3f   :  { %3740 = vst [vmem:[#allocation96_spill] sm:$0xff] %v2898_v25  ;;  %3741 = vst [vmem:[#allocation97_spill] sm:$0xff] %v2903_v24  ;;  %v2908_v23 = vld [vmem:[%s3631_s14 + $0x4] sm:$0xf]  ;;  %v2913_v2 = vld [vmem:[%s3631_s14 + $0x8] sm:$0xf] }
  0x40   :  { %3742 = vst [vmem:[#allocation98_spill] sm:$0xff] %v2908_v23  ;;  %3743 = vst [vmem:[#allocation99_spill] sm:$0xff] %v2913_v2  ;;  %v2918_v26 = vld [vmem:[%s3631_s14 + $0xc] sm:$0xf]  ;;  %v2923_v25 = vld [vmem:[%s3631_s14 + $0x10] sm:$0xf] }
  0x41   :  { %3744 = vst [vmem:[#allocation100_spill] sm:$0xff] %v2918_v26  ;;  %3745 = vst [vmem:[#allocation101_spill] sm:$0xff] %v2923_v25  ;;  %v2928_v24 = vld [vmem:[%s3631_s14 + $0x14] sm:$0xf]  ;;  %v2933_v23 = vld [vmem:[%s3631_s14 + $0x18] sm:$0xf] }
  0x42   :  { %3746 = vst [vmem:[#allocation102_spill] sm:$0xff] %v2928_v24  ;;  %3747 = vst [vmem:[#allocation103_spill] sm:$0xff] %v2933_v23  ;;  %v2938_v2 = vld [vmem:[%s3631_s14 + $0x1c] sm:$0xf]  ;;  %v2943_v26 = vld [vmem:[%s3631_s14 + $0x20] sm:$0xf] }
  0x43   :  { %3748 = vst [vmem:[#allocation104_spill] sm:$0xff] %v2938_v2  ;;  %3749 = vst [vmem:[#allocation105_spill] sm:$0xff] %v2943_v26  ;;  %v2948_v25 = vld [vmem:[%s3631_s14 + $0x24] sm:$0xf]  ;;  %v2953_v24 = vld [vmem:[%s3631_s14 + $0x28] sm:$0xf] }
  0x44   :  { %3750 = vst [vmem:[#allocation106_spill] sm:$0xff] %v2948_v25  ;;  %3751 = vst [vmem:[#allocation107_spill] sm:$0xff] %v2953_v24  ;;  %v2958_v23 = vld [vmem:[%s3631_s14 + $0x2c] sm:$0xf]  ;;  %v2963_v2 = vld [vmem:[%s3631_s14 + $0x30] sm:$0xf] }
  0x45   :  { %3752 = vst [vmem:[#allocation108_spill] sm:$0xff] %v2958_v23  ;;  %3753 = vst [vmem:[#allocation109_spill] sm:$0xff] %v2963_v2  ;;  %v2968_v26 = vld [vmem:[%s3631_s14 + $0x34] sm:$0xf]  ;;  %v2973_v25 = vld [vmem:[%s3631_s14 + $0x38] sm:$0xf] }
  0x46   :  { %3754 = vst [vmem:[#allocation110_spill] sm:$0xff] %v2968_v26  ;;  %3755 = vst [vmem:[#allocation111_spill] sm:$0xff] %v2973_v25  ;;  %v2978_v24 = vld [vmem:[%s3631_s14 + $0x3c] sm:$0xf]  ;;  %v2983_v23 = vld [vmem:[%s3632_s15] ss:$0 sm:$0xff] }
  0x47   :  { %3756 = vst [vmem:[#allocation112_spill] sm:$0xff] %v2978_v24  ;;  %3757 = vst [vmem:[#allocation113_spill] sm:$0xff] %v2983_v23  ;;  %v2988_v2 = vld [vmem:[%s3632_s15 + $0x1] ss:$0 sm:$0xff]  ;;  %v2993_v26 = vld [vmem:[%s3632_s15 + $0x2] ss:$0 sm:$0xff] }
  0x48   :  { %3758 = vst [vmem:[#allocation114_spill] sm:$0xff] %v2988_v2  ;;  %3759 = vst [vmem:[#allocation115_spill] sm:$0xff] %v2993_v26  ;;  %v2998_v25 = vld [vmem:[%s3632_s15 + $0x3] ss:$0 sm:$0xff]  ;;  %v207_v24 = vld [vmem:[%s3621_s4] sm:$0x3]  }
  0x49   :  { %3760 = vst [vmem:[#allocation116_spill] sm:$0xff] %v2998_v25  ;;  %v208_v23 = vld [vmem:[%s3622_s5] sm:$0x3]  }
  0x4a LB: > { %v3761_v12 = vld [vmem:[#allocation70_spill] sm:$0xff]  ;;  %3762 = vst [vmem:[#allocation117_spill] sm:$0xff] %v2248_v23  ;;  %3763 = vst [vmem:[#allocation118_spill] sm:$0xff] %v2252_v24  ;;  %v3764_v13 = vld [vmem:[#allocation68_spill] sm:$0xff]  ;;  %v3642_v26 = vmov 0.0   ;;  %vm2259_vm1 = vmmov 0   ;;  %v2248_v23 = vphi %v208_v23, %v1842_v23   ;;  %s2256_s22 = sphi %s3010_s22, %s214_s22   ;;  %v2252_v24 = vphi %v207_v24, %v1841_v24  }
  0x4b   : > { %v3765_v14 = vld [vmem:[#allocation67_spill] sm:$0xff]  ;;  %2020 = vmatprep.subr.bf16.mxu0 %v3642_v26  ;;  %2024 = vmatprep.mubr.msk.bf16.mxu0 %vm2259_vm1, %v3642_v26  ;;  %v3766_v15 = vld [vmem:[#allocation66_spill] sm:$0xff]  ;;  %v3767_v16 = vld [vmem:[#allocation65_spill] sm:$0xff]  ;;  %vm236_vm2 = vcmask 261120   ;;  %vm595_vm3 = vcmask 130112   ;;  %vm602_vm4 = vcmask 195712  }
  0x4c   : > { %v1926_v25 = vcombine.low %v3765_v14, %v3764_v13  ;;  %v1925_v2 = vcombine.low %v3767_v16, %v3766_v15  ;;  %2028 = vmatprep.subr.bf16.mxu1 %v3642_v26  ;;  %2032 = vmatprep.mubr.msk.bf16.mxu1 %vm2259_vm1, %v3642_v26  ;;  %v3034_v13 = vpack.c.bf16 %v2252_v24, %v2252_v24  ;;  %v2261_v14 = vmov 1966171168   ;;  %v3769_v34 = vld [vmem:[#allocation69_spill] sm:$0xff]  ;;  %v3770_v44 = vld [vmem:[#allocation50_spill] sm:$0xff]  ;;  %v3772_v45 = vld [vmem:[#allocation51_spill] sm:$0xff]  ;;  %s3797_s15 = sld [smem:[#allocation122_spill]] }
  0x4d   : > { %v282_v15 = vunpack.c.l.s4 %v2261_v14  ;;  %v3768_v24 = vlaneseq  ;;  %v3771_v35 = vld [vmem:[#allocation41_spill] sm:$0xff]  ;;  %v3773_v36 = vld [vmem:[#allocation42_spill] sm:$0xff]  ;;  %v3774_v46 = vld [vmem:[#allocation52_spill] sm:$0xff]  ;;  %vm609_vm5 = vcmask 261312   ;;  %vm616_vm6 = vcmask 326912   ;;  %s1978_s10 = sshll.u32 %s2256_s22, 1 }
  0x4e   : > { %2021 = vmatpush3.bf16.msra.mxu0 %v1926_v25  ;;  %v3644_v25 = vmov 0   ;;  %v3775_v37 = vld [vmem:[#allocation43_spill] sm:$0xff]  ;;  %v3776_v47 = vld [vmem:[#allocation53_spill] sm:$0xff]  ;;  %v3777_v38 = vld [vmem:[#allocation44_spill] sm:$0xff]  ;;  %vm623_vm7 = vcmask 392512   ;;  %vm630_vm8 = vcmask 458112  }
  0x4f   : > { %2022 = vmatprep.subr.bf16.mxu0 %v3642_v26  ;;  %2164 = vset.pattern.permute.xlu0 %v3644_v25  ;;  %v283_v16 = vunpack.c.0.s8 %v282_v15  ;;  %v3044_v23 = vshrl.u32 %v3768_v24, 7  ;;  %v3778_v48 = vld [vmem:[#allocation54_spill] sm:$0xff]  ;;  %v3779_v39 = vld [vmem:[#allocation45_spill] sm:$0xff]  ;;  %v3780_v49 = vld [vmem:[#allocation55_spill] sm:$0xff]  ;;  %vm637_vm9 = vcmask 523712   ;;  %vm644_vm10 = vcmask 589312  }
  0x50   : > { %2165 = vset.pattern.permute.xlu1 %v3644_v25  ;;  %v3781_v40 = vld [vmem:[#allocation46_spill] sm:$0xff]  ;;  %v3782_v41 = vld [vmem:[#allocation47_spill] sm:$0xff]  ;;  %v3783_v51 = vld [vmem:[#allocation57_spill] sm:$0xff]  ;;  %vm651_vm11 = vcmask 654912   ;;  %vm658_vm12 = vcmask 720512   ;;  %vm665_vm13 = vcmask 786112  }
  0x51   : > { %v3784_v42 = vld [vmem:[#allocation48_spill] sm:$0xff]  ;;  %v3785_v52 = vld [vmem:[#allocation58_spill] sm:$0xff]  ;;  %v3786_v43 = vld [vmem:[#allocation49_spill] sm:$0xff]  ;;  %vm672_vm14 = vcmask 851712   ;;  %vm679_vm15 = vcmask 917312   ;;  %s1839_s23 = scalar_lea.vmem [#allocation5], %s1978_s10 }
  0x52   : > { %2023 = vmatpush3.bf16.msra.mxu0 %v1925_v2  ;;  %v286_v2 = vsub.s32 %v283_v16, %v3044_v23  ;;  %v3787_v53 = vld [vmem:[#allocation59_spill] sm:$0xff]  ;;  %v3788_v54 = vld [vmem:[#allocation60_spill] sm:$0xff]  ;;  %v3789_v55 = vld [vmem:[#allocation61_spill] sm:$0xff]  ;;  %s1099_s2 = scalar_lea.vmem %s3797_s15, %s2256_s22  ;;  %s1836_s11 = scalar_lea.vmem [#allocation3], %s1978_s10 }
  0x53   : > { %2036 = vmatprep.subr.bf16.mxu0 %v3642_v26  ;;  %v3790_v33 = vld [vmem:[#allocation71_spill] sm:$0xff]  ;;  %v3791_v0 = vld [vmem:[#allocation62_spill] sm:$0xff]  ;;  %v3792_v50 = vld [vmem:[#allocation56_spill] sm:$0xff] }
  0x54   : > { %v3793_v18 = vld [vmem:[#allocation64_spill] sm:$0xff]  ;;  %v3794_v3 = vld [vmem:[#allocation63_spill] sm:$0xff] }
  0x55   : > { %2025 = vmatmul.mubr.msk.bf16.vlgmr.msra.gmra.mxu0 %vm236_vm2, %v3034_v13 }
  0x56   : > { %2040 = vmatprep.mubr.msk.bf16.mxu0 %vm2259_vm1, %v3642_v26  ;;  %v3049_v26 = vsub.s32 0, %v3044_v23 }
 0x115   : > { %v274_v21 = vpop.f32.mrf.mxu0 }
 0x116   : > { %v275_v22 = vadd.f32 %v3769_v34, %v274_v21 }
 0x117   : > { %v2026_v19 = vpop.f32.mrf.mxu0 }
 0x118   : > { %v287_v20 = vrot.slane %v275_v22, %v286_v2 }
 0x119   : > { %v277_v29 = vpop.f32.mrf.mxu0 }
 0x11a   : > { %v295_v4 = vrot.slane %v287_v20, %v286_v2  ;;  %v288_v34 = vcombine.high %v287_v20, %v287_v20 }
 0x11b   : > { %v2027_v6 = vpop.f32.mrf.mxu0 }
 0x11c   : > { %v3052_v25 = vrot.slane %v295_v4, %v3049_v26 }
 0x11e   : > { %v322_v14 = vadd.f32 %v3052_v25, %v3770_v44  ;;  %v313_v15 = vadd.f32 %v3052_v25, %v3771_v35  ;;  %v323_v16 = vadd.f32 %v3052_v25, %v3772_v45  ;;  %v314_v19 = vadd.f32 %v3052_v25, %v3773_v36 }
 0x11f   : > { %v324_v21 = vadd.f32 %v3052_v25, %v3774_v46  ;;  %v315_v6 = vadd.f32 %v3052_v25, %v3775_v37  ;;  %v325_v36 = vadd.f32 %v3052_v25, %v3776_v47  ;;  %v316_v46 = vadd.f32 %v3052_v25, %v3777_v38 }
 0x120   : > { %v354_v4 = vmax.f32 %v322_v14, 0.0  ;;  %v345_v22 = vmax.f32 %v313_v15, 0.0  ;;  %v355_v24 = vmax.f32 %v323_v16, 0.0  ;;  %v346_v29 = vmax.f32 %v314_v19, 0.0 }
 0x121   : > { %v356_v8 = vmax.f32 %v324_v21, 0.0  ;;  %v347_v45 = vmax.f32 %v315_v6, 0.0  ;;  %v302_v16 = vrot.slane %v288_v34, %v286_v2  ;;  %v357_v6 = vmax.f32 %v325_v36, 0.0 }
 0x122   : > { %v392_v44 = vmul.f32 %v3761_v12, %v354_v4  ;;  %v383_v35 = vmul.f32 %v3761_v12, %v345_v22  ;;  %v393_v15 = vmul.f32 %v3761_v12, %v355_v24  ;;  %v384_v20 = vmul.f32 %v3761_v12, %v346_v29 }
 0x123   : > { %v394_v19 = vmul.f32 %v3761_v12, %v356_v8  ;;  %v385_v21 = vmul.f32 %v3761_v12, %v347_v45  ;;  %v348_v4 = vmax.f32 %v316_v46, 0.0  ;;  %v395_v36 = vmul.f32 %v3761_v12, %v357_v6 }
 0x124   : > { %v442_v27 = vsel %vm236_vm2, %v392_v44, 0.0  ;;  %v415_v14 = vsel %vm236_vm2, %v383_v35, 0.0  ;;  %v445_v22 = vsel %vm236_vm2, %v393_v15, 0.0  ;;  %v418_v37 = vsel %vm236_vm2, %v384_v20, 0.0 }
 0x125   : > { %443 = vadd.xlane.f32.xlu1 %v442_v27  ;;  %416 = vadd.xlane.f32.xlu0 %v415_v14  ;;  %v326_v35 = vadd.f32 %v3052_v25, %v3778_v48  ;;  %v317_v44 = vadd.f32 %v3052_v25, %v3779_v39  ;;  %v3085_v27 = vrot.slane %v302_v16, %v3049_v26  ;;  %v448_v8 = vsel %vm236_vm2, %v394_v19, 0.0 }
 0x126   : > { %v421_v34 = vsel %vm236_vm2, %v385_v21, 0.0  ;;  %v386_v45 = vmul.f32 %v3761_v12, %v348_v4  ;;  %v327_v24 = vadd.f32 %v3052_v25, %v3780_v49  ;;  %v318_v29 = vadd.f32 %v3052_v25, %v3781_v40 }
 0x127   : > { %v358_v46 = vmax.f32 %v326_v35, 0.0  ;;  %v349_v2 = vmax.f32 %v317_v44, 0.0  ;;  %v319_v15 = vadd.f32 %v3052_v25, %v3782_v41  ;;  %v329_v20 = vadd.f32 %v3085_v27, %v3783_v51 }
 0x128   : > { %v424_v14 = vsel %vm236_vm2, %v386_v45, 0.0  ;;  %v359_v21 = vmax.f32 %v327_v24, 0.0  ;;  %v350_v6 = vmax.f32 %v318_v29, 0.0  ;;  %v320_v35 = vadd.f32 %v3052_v25, %v3784_v42 }
 0x129   : > { %446 = vadd.xlane.f32.xlu1 %v445_v22  ;;  %419 = vadd.xlane.f32.xlu0 %v418_v37  ;;  %v451_v37 = vsel %vm236_vm2, %v395_v36, 0.0  ;;  %v396_v16 = vmul.f32 %v3761_v12, %v358_v46  ;;  %v387_v19 = vmul.f32 %v3761_v12, %v349_v2  ;;  %v351_v4 = vmax.f32 %v319_v15, 0.0 }
 0x12a   : > { %v361_v22 = vmax.f32 %v329_v20, 0.0  ;;  %v330_v44 = vadd.f32 %v3085_v27, %v3785_v52  ;;  %v397_v36 = vmul.f32 %v3761_v12, %v359_v21  ;;  %v388_v45 = vmul.f32 %v3761_v12, %v350_v6 }
 0x12b   : > { %v389_v46 = vmul.f32 %v3761_v12, %v351_v4  ;;  %v352_v24 = vmax.f32 %v320_v35, 0.0  ;;  %v321_v15 = vadd.f32 %v3052_v25, %v3786_v43  ;;  %v331_v20 = vadd.f32 %v3085_v27, %v3787_v53 }
 0x12c   : > { %v399_v2 = vmul.f32 %v3761_v12, %v361_v22  ;;  %v362_v29 = vmax.f32 %v330_v44, 0.0  ;;  %v332_v35 = vadd.f32 %v3085_v27, %v3788_v54  ;;  %v618_v40 = vadd.s32 4294967256, %v2410_v10 }
 0x12d   : > { %449 = vadd.xlane.f32.xlu1 %v448_v8  ;;  %422 = vadd.xlane.f32.xlu0 %v421_v34  ;;  %v454_v8 = vsel %vm236_vm2, %v396_v16, 0.0  ;;  %v427_v34 = vsel %vm236_vm2, %v387_v19, 0.0  ;;  %v433_v16 = vsel %vm236_vm2, %v389_v46, 0.0  ;;  %v390_v19 = vmul.f32 %v3761_v12, %v352_v24 }
 0x12e   : > { %v400_v21 = vmul.f32 %v3761_v12, %v362_v29  ;;  %v463_v6 = vsel %vm236_vm2, %v399_v2, 0.0  ;;  %v353_v4 = vmax.f32 %v321_v15, 0.0  ;;  %v363_v22 = vmax.f32 %v331_v20, 0.0 }
 0x12f   : > { %v436_v44 = vsel %vm236_vm2, %v390_v19, 0.0  ;;  %v333_v46 = vadd.f32 %v3085_v27, %v3789_v55  ;;  %v334_v2 = vadd.f32 %v3085_v27, %v2641_v56  ;;  %v335_v19 = vadd.f32 %v3085_v27, %v2646_v57 }
 0x130   : > { %v632_v41 = vadd.s32 4294967240, %v2410_v10 }
 0x131   : > { %452 = vadd.xlane.f32.xlu1 %v451_v37  ;;  %425 = vadd.xlane.f32.xlu0 %v424_v14  ;;  %v457_v37 = vsel %vm236_vm2, %v397_v36, 0.0  ;;  %v430_v14 = vsel %vm236_vm2, %v388_v45, 0.0  ;;  %v401_v36 = vmul.f32 %v3761_v12, %v363_v22  ;;  %v364_v45 = vmax.f32 %v332_v35, 0.0 }
 0x132   : > { %v336_v22 = vadd.f32 %v3085_v27, %v2651_v58 }
 0x133   : > { %v469_v29 = vsel %vm236_vm2, %v401_v36, 0.0 }
 0x135   : > { %455 = vadd.xlane.f32.xlu1 %v454_v8  ;;  %428 = vadd.xlane.f32.xlu0 %v427_v34  ;;  %v466_v8 = vsel %vm236_vm2, %v400_v21, 0.0  ;;  %v391_v34 = vmul.f32 %v3761_v12, %v353_v4  ;;  %v367_v4 = vmax.f32 %v335_v19, 0.0  ;;  %v340_v19 = vadd.f32 %v3085_v27, %v2671_v62 }
 0x137   : > { %v439_v24 = vsel %vm236_vm2, %v391_v34, 0.0  ;;  %v337_v34 = vadd.f32 %v3085_v27, %v2656_v59 }
 0x139   : > { %458 = vadd.xlane.f32.xlu1 %v457_v37  ;;  %431 = vadd.xlane.f32.xlu0 %v430_v14  ;;  %v402_v37 = vmul.f32 %v3761_v12, %v364_v45  ;;  %v365_v14 = vmax.f32 %v333_v46, 0.0  ;;  %v369_v46 = vmax.f32 %v337_v34, 0.0  ;;  %v342_v34 = vadd.f32 %v3085_v27, %v3791_v0 }
 0x13a   : > { %v3211_v0 = vsub.s32 %v2410_v10, %v3044_v23 }
 0x13b   : > { %v472_v15 = vsel %vm236_vm2, %v402_v37, 0.0  ;;  %v403_v20 = vmul.f32 %v3761_v12, %v365_v14  ;;  %v339_v14 = vadd.f32 %v3085_v27, %v2666_v61 }
 0x13d   : > { %434 = vadd.xlane.f32.xlu0 %v433_v16  ;;  %464 = vadd.xlane.f32.xlu1 %v463_v6  ;;  %v366_v16 = vmax.f32 %v334_v2, 0.0  ;;  %v475_v21 = vsel %vm236_vm2, %v403_v20, 0.0  ;;  %v338_v2 = vadd.f32 %v3085_v27, %v2661_v60 }
 0x13f   : > { %v404_v6 = vmul.f32 %v3761_v12, %v366_v16  ;;  %v370_v37 = vmax.f32 %v338_v2, 0.0  ;;  %v371_v16 = vmax.f32 %v339_v14, 0.0  ;;  %v328_v2 = vadd.f32 %v3052_v25, %v3792_v50 }
 0x140   : > { %v344_v14 = vadd.f32 %v3085_v27, %v3793_v18 }
 0x141   : > { %437 = vadd.xlane.f32.xlu0 %v436_v44  ;;  %467 = vadd.xlane.f32.xlu1 %v466_v8  ;;  %v478_v35 = vsel %vm236_vm2, %v404_v6, 0.0  ;;  %v405_v44 = vmul.f32 %v3761_v12, %v367_v4  ;;  %v368_v8 = vmax.f32 %v336_v22, 0.0  ;;  %v408_v20 = vmul.f32 %v3761_v12, %v370_v37 }
 0x142   : > { %v409_v6 = vmul.f32 %v3761_v12, %v371_v16  ;;  %v372_v4 = vmax.f32 %v340_v19, 0.0  ;;  %v341_v22 = vadd.f32 %v3085_v27, %v2676_v63  ;;  %v360_v37 = vmax.f32 %v328_v2, 0.0 }
 0x143   : > { %v481_v36 = vsel %vm236_vm2, %v405_v44, 0.0  ;;  %v406_v45 = vmul.f32 %v3761_v12, %v368_v8  ;;  %v376_v19 = vmax.f32 %v344_v14, 0.0 }
 0x144   : > { %v410_v44 = vmul.f32 %v3761_v12, %v372_v4  ;;  %v373_v8 = vmax.f32 %v341_v22, 0.0  ;;  %v398_v16 = vmul.f32 %v3761_v12, %v360_v37 }
 0x145   : > { %440 = vadd.xlane.f32.xlu0 %v439_v24  ;;  %470 = vadd.xlane.f32.xlu1 %v469_v29  ;;  %v484_v24 = vsel %vm236_vm2, %v406_v45, 0.0  ;;  %v407_v29 = vmul.f32 %v3761_v12, %v369_v46  ;;  %v374_v46 = vmax.f32 %v342_v34, 0.0 }
 0x146   : > { %v411_v45 = vmul.f32 %v3761_v12, %v373_v8 }
 0x149   : > { %473 = vadd.xlane.f32.xlu1 %v472_v15  ;;  %v487_v15 = vsel %vm236_vm2, %v407_v29, 0.0  ;;  %v412_v29 = vmul.f32 %v3761_v12, %v374_v46 }
 0x14d   : > { %476 = vadd.xlane.f32.xlu1 %v475_v21  ;;  %v490_v21 = vsel %vm236_vm2, %v408_v20, 0.0  ;;  %v502_v20 = vsel %vm236_vm2, %v412_v29, 0.0 }
 0x151   : > { %479 = vadd.xlane.f32.xlu1 %v478_v35  ;;  %v493_v35 = vsel %vm236_vm2, %v409_v6, 0.0  ;;  %v414_v6 = vmul.f32 %v3761_v12, %v376_v19 }
 0x153   : > { %v508_v22 = vsel %vm236_vm2, %v414_v6, 0.0  ;;  %v597_v6 = vadd.s32 4294967280, %v2410_v10 }
 0x155   : > { %482 = vadd.xlane.f32.xlu1 %v481_v36  ;;  %v496_v36 = vsel %vm236_vm2, %v410_v44, 0.0  ;;  %v3218_v18 = vsub.s32 %v597_v6, %v3044_v23 }
 0x159   : > { %485 = vadd.xlane.f32.xlu1 %v484_v24  ;;  %v499_v24 = vsel %vm236_vm2, %v411_v45, 0.0 }
 0x15b   : > { %517 = vperm.xlu0 %2164, %v3790_v33  }
 0x15d   : > { %488 = vadd.xlane.f32.xlu1 %v487_v15  ;;  %v343_v15 = vadd.f32 %v3085_v27, %v3794_v3 }
 0x15f   : > { %v375_v25 = vmax.f32 %v343_v15, 0.0 }
 0x161   : > { %491 = vadd.xlane.f32.xlu1 %v490_v21  ;;  %v460_v21 = vsel %vm236_vm2, %v398_v16, 0.0  ;;  %v413_v4 = vmul.f32 %v3761_v12, %v375_v25  ;;  %v611_v12 = vadd.s32 4294967264, %v2410_v10 }
 0x165   : > { %494 = vadd.xlane.f32.xlu1 %v493_v35  ;;  %v505_v35 = vsel %vm236_vm2, %v413_v4, 0.0 }
 0x169   : > { %497 = vadd.xlane.f32.xlu1 %v496_v36 }
 0x16d   : > { %500 = vadd.xlane.f32.xlu1 %v499_v24 }
 0x171   : > { %503 = vadd.xlane.f32.xlu1 %v502_v20 }
 0x175   : > { %461 = vadd.xlane.f32.xlu1 %v460_v21  ;;  %v590_v21 = vadd.s32 4294967288, %v2410_v10 }
 0x177   : > { %v3214_v3 = vsub.s32 %v590_v21, %v3044_v23  ;;  %v625_v21 = vadd.s32 4294967248, %v2410_v10 }
 0x179   : > { %509 = vadd.xlane.f32.xlu1 %v508_v22 }
 0x17a   : > { %506 = vadd.xlane.f32.xlu0 %v505_v35  ;;  %v604_v35 = vadd.s32 4294967272, %v2410_v10 }
 0x17c   : > { %v3223_v38 = vsub.s32 %v604_v35, %v3044_v23  ;;  %v3236_v35 = vsub.s32 %v611_v12, %v3044_v23  ;;  %v3251_v12 = vsub.s32 %v632_v41, %v3044_v23 }
 0x1ae   : > { %v3186_v27 = vpop.xlane.xlu1 %443  ;;  %v417_v44 = vpop.xlane.xlu0 %416 }
 0x1b2   : > { %v3188_v8 = vpop.xlane.xlu1 %446  ;;  %v420_v34 = vpop.xlane.xlu0 %419 }
 0x1b6   : > { %v3190_v36 = vpop.xlane.xlu1 %449  ;;  %v423_v45 = vpop.xlane.xlu0 %422 }
 0x1ba   : > { %v3192_v46 = vpop.xlane.xlu1 %452  ;;  %v426_v2 = vpop.xlane.xlu0 %425 }
 0x1be   : > { %v3194_v24 = vpop.xlane.xlu1 %455  ;;  %v429_v29 = vpop.xlane.xlu0 %428 }
 0x1c2   : > { %v3196_v37 = vpop.xlane.xlu1 %458  ;;  %v432_v14 = vpop.xlane.xlu0 %431 }
 0x1c6   : > { %v435_v15 = vpop.xlane.xlu0 %434  ;;  %v3198_v20 = vpop.xlane.xlu1 %464 }
 0x1ca   : > { %v3200_v16 = vpop.xlane.xlu1 %467  ;;  %v438_v19 = vpop.xlane.xlu0 %437 }
 0x1ce   : > { %v3202_v25 = vpop.xlane.xlu1 %470  ;;  %v441_v4 = vpop.xlane.xlu0 %440 }
 0x1d2   : > { %v3206_v22 = vpop.xlane.xlu1 %473 }
 0x1d6   : > { %v3220_v33 = vpop.permute.xlu0 %517  ;;  %v3225_v39 = vpop.xlane.xlu1 %476 }
 0x1d7   : > { %v520_v42 = vadd.f32 %v3220_v33, %v417_v44  ;;  %v521_v6 = vadd.f32 %v3220_v33, %v420_v34  ;;  %v522_v43 = vadd.f32 %v3220_v33, %v423_v45  ;;  %v523_v47 = vadd.f32 %v3220_v33, %v426_v2 }
 0x1d8   : > { %v524_v48 = vadd.f32 %v3220_v33, %v429_v29  ;;  %v639_v44 = vadd.s32 4294967232, %v2410_v10  ;;  %v3243_v34 = vsub.s32 %v618_v40, %v3044_v23  ;;  %v3248_v2 = vsub.s32 %v625_v21, %v3044_v23 }
 0x1d9   : > { %v589_v49 = vrot.slane %v520_v42, %v3211_v0  ;;  %v594_v50 = vrot.slane %v521_v6, %v3214_v3  ;;  %v601_v51 = vrot.slane %v522_v43, %v3218_v18  ;;  %v608_v29 = vrot.slane %v523_v47, %v3223_v38 }
 0x1da   : > { %v3245_v45 = vpop.xlane.xlu1 %479  ;;  %v646_v43 = vadd.s32 4294967224, %v2410_v10  ;;  %v615_v40 = vrot.slane %v524_v48, %v3236_v35  ;;  %v525_v52 = vadd.f32 %v3220_v33, %v432_v14  ;;  %v653_v21 = vadd.s32 4294967216, %v2410_v10 }
 0x1db   : > { %v596_v42 = vsel %vm595_vm3, %v594_v50, %v589_v49  ;;  %v526_v41 = vadd.f32 %v3220_v33, %v435_v15  ;;  %v3263_v54 = vsub.s32 %v639_v44, %v3044_v23  ;;  %v660_v47 = vadd.s32 4294967208, %v2410_v10 }
 0x1dc   : > { %v603_v6 = vsel %vm602_vm4, %v601_v51, %v596_v42  ;;  %v622_v50 = vrot.slane %v525_v52, %v3243_v34  ;;  %v667_v48 = vadd.s32 4294967200, %v2410_v10  ;;  %v527_v42 = vadd.f32 %v3220_v33, %v438_v19 }
 0x1dd   : > { %v610_v53 = vsel %vm609_vm5, %v608_v29, %v603_v6  ;;  %v629_v14 = vrot.slane %v526_v41, %v3248_v2  ;;  %v3272_v29 = vsub.s32 %v646_v43, %v3044_v23  ;;  %v674_v15 = vadd.s32 4294967192, %v2410_v10 }
 0x1de   : > { %v617_v49 = vsel %vm616_vm6, %v615_v40, %v610_v53  ;;  %v483_v51 = vpop.xlane.xlu1 %482  ;;  %v528_v6 = vadd.f32 %v3220_v33, %v441_v4  ;;  %v529_v52 = vadd.f32 %v3220_v33, %v3186_v27  ;;  %v3280_v53 = vsub.s32 %v653_v21, %v3044_v23 }
 0x1df   : > { %v624_v44 = vsel %vm623_vm7, %v622_v50, %v617_v49  ;;  %v636_v41 = vrot.slane %v527_v42, %v3251_v12  ;;  %v530_v19 = vadd.f32 %v3220_v33, %v3188_v8  ;;  %v3287_v43 = vsub.s32 %v660_v47, %v3044_v23 }
 0x1e0   : > { %v631_v40 = vsel %vm630_vm8, %v629_v14, %v624_v44  ;;  %v643_v49 = vrot.slane %v528_v6, %v3263_v54  ;;  %v531_v4 = vadd.f32 %v3220_v33, %v3190_v36  ;;  %v532_v27 = vadd.f32 %v3220_v33, %v3192_v46 }
 0x1e1   : > { %v3295_v21 = vsub.s32 %v667_v48, %v3044_v23  ;;  %v638_v50 = vsel %vm637_vm9, %v636_v41, %v631_v40  ;;  %v650_v14 = vrot.slane %v529_v52, %v3272_v29  ;;  %v3300_v8 = vsub.s32 %v674_v15, %v3044_v23 }
 0x1e2   : > { %v486_v55 = vpop.xlane.xlu1 %485  ;;  %v645_v47 = vsel %vm644_vm10, %v643_v49, %v638_v50  ;;  %v657_v42 = vrot.slane %v530_v19, %v3280_v53  ;;  %v533_v36 = vadd.f32 %v3220_v33, %v3194_v24  ;;  %v664_v48 = vrot.slane %v531_v4, %v3287_v43 }
 0x1e3   : > { %v652_v46 = vsel %vm651_vm11, %v650_v14, %v645_v47  ;;  %v671_v52 = vrot.slane %v532_v27, %v3295_v21  ;;  %v536_v49 = vadd.f32 %v3220_v33, %v3198_v20  ;;  %v537_v4 = vadd.f32 %v3220_v33, %v3200_v16 }
 0x1e4   : > { %v659_v6 = vsel %vm658_vm12, %v657_v42, %v652_v46  ;;  %v678_v40 = vrot.slane %v533_v36, %v3300_v8  ;;  %v538_v27 = vadd.f32 %v3220_v33, %v3202_v25  ;;  %v539_v46 = vadd.f32 %v3220_v33, %v3206_v22 }
 0x1e5   : > { %v666_v15 = vsel %vm665_vm13, %v664_v48, %v659_v6  ;;  %v698_v14 = vrot.slane %v536_v49, %v3211_v0  ;;  %v702_v47 = vrot.slane %v537_v4, %v3214_v3  ;;  %v540_v16 = vadd.f32 %v3220_v33, %v3225_v39 }
 0x1e6   : > { %v489_v44 = vpop.xlane.xlu1 %488  ;;  %v673_v41 = vsel %vm672_vm14, %v671_v52, %v666_v15  ;;  %v707_v42 = vrot.slane %v538_v27, %v3218_v18  ;;  %v712_v25 = vrot.slane %v539_v46, %v3223_v38  ;;  %v541_v0 = vadd.f32 %v3220_v33, %v3245_v45 }
 0x1e7   : > { %v3314_v19 = vsel %vm679_vm15, %v678_v40, %v673_v41  ;;  %v703_v48 = vsel %vm595_vm3, %v702_v47, %v698_v14  ;;  %v542_v3 = vadd.f32 %v3220_v33, %v483_v51  ;;  %v543_v52 = vadd.f32 %v3220_v33, %v486_v55 }
 0x1e8   : > { %v708_v20 = vsel %vm602_vm4, %v707_v42, %v703_v48  ;;  %v717_v22 = vrot.slane %v540_v16, %v3236_v35  ;;  %v544_v15 = vadd.f32 %v3220_v33, %v489_v44  ;;  %v722_v41 = vrot.slane %v541_v0, %v3243_v34 }
 0x1e9   : > { %v713_v18 = vsel %vm609_vm5, %v712_v25, %v708_v20  ;;  %v727_v49 = vrot.slane %v542_v3, %v3248_v2  ;;  %v732_v51 = vrot.slane %v543_v52, %v3251_v12  ;;  %v688_v55 = vadd.s32 4294967176, %v2410_v10 }
 0x1ea   : > { %v492_v24 = vpop.xlane.xlu1 %491  ;;  %v718_v38 = vsel %vm616_vm6, %v717_v22, %v713_v18  ;;  %v737_v35 = vrot.slane %v544_v15, %v3263_v54  ;;  %v681_v34 = vadd.s32 4294967184, %v2410_v10  ;;  %vm686_vm3 = vcmask 982912  }
 0x1eb   : > { %v545_v39 = vadd.f32 %v3220_v33, %v492_v24  ;;  %v723_v24 = vsel %vm623_vm7, %v722_v41, %v718_v38  ;;  %v691_v54 = vsub.s32 %v688_v55, %v3044_v23  ;;  %vm693_vm4 = vcmask 1048512  }
 0x1ec   : > { %v684_v16 = vsub.s32 %v681_v34, %v3044_v23  ;;  %vm774_vm5 = vcmask 1041409   ;;  %vm778_vm6 = vcmask 1041408  }
 0x1ed   : > { %v742_v14 = vrot.slane %v545_v39, %v3272_v29  ;;  %v534_v29 = vadd.f32 %v3220_v33, %v3196_v37 }
 0x1ee   : > { %v495_v50 = vpop.xlane.xlu1 %494 }
 0x1ef   : > { %v546_v45 = vadd.f32 %v3220_v33, %v495_v50  ;;  %v728_v50 = vsel %vm630_vm8, %v727_v49, %v723_v24  ;;  %v685_v37 = vrot.slane %v534_v29, %v684_v16  ;;  %v1936_v29 = vcombine.low %v2833_v28, %v2838_v5 }
 0x1f0   : > { %v733_v47 = vsel %vm637_vm9, %v732_v51, %v728_v50  ;;  %v1932_v51 = vcombine.low %v2743_v9, %v2748_v31  ;;  %v859_v50 = vsub.s32 1, %v3044_v23  ;;  %vm1163_vm8 = vcmask 130048  }
 0x1f1   : > { %v747_v12 = vrot.slane %v546_v45, %v3280_v53  ;;  %v738_v46 = vsel %vm644_vm10, %v737_v35, %v733_v47  ;;  %2037 = vmatpush3.bf16.msra.mxu0 %v1936_v29 }
 0x1f2   : > { %v498_v36 = vpop.xlane.xlu1 %497  ;;  %v743_v53 = vsel %vm651_vm11, %v742_v14, %v738_v46  ;;  %2029 = vmatpush3.bf16.msra.mxu1 %v1932_v51  ;;  %v3796_v46 = vmov 0  }
 0x1f3   : > { %v547_v4 = vadd.f32 %v3220_v33, %v498_v36  ;;  %v748_v0 = vsel %vm658_vm12, %v747_v12, %v743_v53  ;;  %v3798_v53 = vld [vmem:[#allocation88_spill] sm:$0xff] }
 0x1f5   : > { %v752_v42 = vrot.slane %v547_v4, %v3287_v43  ;;  %v1931_v4 = vcombine.low %v2733_v11, %v2738_v32 }
 0x1f6   : > { %v501_v6 = vpop.xlane.xlu1 %500 }
 0x1f7   : > { %v548_v44 = vadd.f32 %v3220_v33, %v501_v6  ;;  %v753_v18 = vsel %vm665_vm13, %v752_v42, %v748_v0 }
 0x1f9   : > { %v757_v48 = vrot.slane %v548_v44, %v3295_v21 }
 0x1fa   : > { %v504_v40 = vpop.xlane.xlu1 %503 }
 0x1fb   : > { %v549_v2 = vadd.f32 %v3220_v33, %v504_v40  ;;  %v758_v52 = vsel %vm672_vm14, %v757_v48, %v753_v18  ;;  %v3802_v18 = vld [vmem:[#allocation86_spill] sm:$0xff] }
 0x1fd   : > { %v762_v6 = vrot.slane %v549_v2, %v3300_v8  ;;  %v687_v8 = vsel %vm686_vm3, %v685_v37, %v3314_v19  ;;  %v3795_v19 = vmov 0.0  }
 0x1fe   : > { %v462_v27 = vpop.xlane.xlu1 %461  ;;  %2030 = vmatprep.subr.bf16.mxu1 %v3795_v19  ;;  %2038 = vmatprep.subr.bf16.mxu0 %v3795_v19 }
 0x1ff   : > { %v535_v36 = vadd.f32 %v3220_v33, %v462_v27  ;;  %v763_v15 = vsel %vm679_vm15, %v762_v6, %v758_v52  ;;  %2031 = vmatpush3.bf16.msra.mxu1 %v1931_v4  ;;  %v1946_v6 = vcombine.low %v3798_v53, %v2858_v1  ;;  %v3808_v53 = vld [vmem:[#allocation30_spill] sm:$0xff] }
 0x200   : > { %2044 = vmatprep.subr.bf16.mxu1 %v3795_v19 }
 0x201   : > { %v692_v21 = vrot.slane %v535_v36, %v691_v54  ;;  %v1827_v36 = vstv %s2256_s22  ;;  %s214_s22 = sadd.s32 1, %s2256_s22  }
 0x202   : > { %v510_v20 = vpop.xlane.xlu1 %509  ;;  %2033 = vmatmul.mubr.msk.bf16.vlgmr.msra.gmra.mxu1 %vm236_vm2, %v3034_v13  ;;  %vm1828_vm7 = vcmp.gt.s32.totalorder %v2696_v17, %v1827_v36  ;;  %p211_p0 = scmp.ge.s32.totalorder %s214_s22, 5  }
 0x203   : > { %v551_v43 = vadd.f32 %v3220_v33, %v510_v20  ;;  %v507_v25 = vpop.xlane.xlu0 %506  ;;  %v694_v39 = vsel %vm693_vm4, %v692_v21, %v687_v8  ;;  %2046 = vmatprep.mubr.msk.bf16.mxu1 %vm2259_vm1, %v3795_v19  ;;  %v1829_v48 = vsel %vm1828_vm7, 1, %v3796_v46  ;;  %v1938_v20 = vcombine.low %v2783_v30, %v2788_v7  ;;  %s2262_s24 = smov (%p211_p0), [#allocation3]  }
 0x204   : > { %v550_v3 = vadd.f32 %v3220_v33, %v507_v25  ;;  %v3800_v25 = vld [vmem:[#allocation84_spill] sm:$0xff]  ;;  %s1848_s25 = sshll.u32 (%p211_p0), %s2262_s24, 4  ;;  %s1849_s25 = int_to_ptr.vmem [resolvable:$true] %s1848_s25 }
 0x205   : > { %v772_v40 = vrot.slane %v551_v43, %v691_v54  ;;  %2045 = vmatpush3.bf16.msra.mxu1 %v1938_v20  ;;  %v3799_v43 = vld [vmem:[#allocation85_spill] sm:$0xff]  ;;  %s2190_s12 = scalar_lea.vmem (%p211_p0), %s1849_s25, 160  ;;  %p2195_p2 = scmp.lt.s32.totalorder (%p211_p0), %s1849_s25, %s1849_s25 }
 0x206   : > { %v767_v22 = vrot.slane %v550_v3, %v684_v16  ;;  %v3407_v16 = vld [vmem:[%s1099_s2] sm:$0x1]  ;;  %2058 = vmatprep.subr.bf16.mxu1 %v3795_v19  ;;  %v1935_v0 = vcombine.low %v3800_v25, %v3799_v43  ;;  %v3801_v3 = vld [vmem:[#allocation87_spill] sm:$0xff]  ;;  %p2191_p1 = scmp.ne.s32.totalorder (%p211_p0), %s1849_s25, %s2190_s12  ;;  %p2196_p3 = scmp.lt.s32.totalorder (%p211_p0), %s2190_s12, %s2190_s12 }
 0x207   : > { %v1945_v21 = vcombine.low %v3802_v18, %v3801_v3  ;;  %v3809_v18 = vld [vmem:[#allocation31_spill] sm:$0xff] }
 0x208   : > { %v768_v41 = vsel %vm686_vm3, %v767_v22, %v763_v15  ;;  %2039 = vmatpush3.bf16.msra.mxu0 %v1935_v0  ;;  %p2197_p4 = por (%p211_p0), %p2196_p3, %p2195_p2 }
 0x209   : > { %v773_v38 = vsel %vm693_vm4, %v772_v40, %v768_v41  ;;  %2050 = vmatprep.subr.bf16.mxu0 %v3795_v19  ;;  %v3803_v41 = vld [vmem:[#allocation26_spill] sm:$0xff] }
 0x20a   : > { %v775_v33 = vsel %vm774_vm5, %v773_v38, %v694_v39  ;;  %2047 = vmatmul.mubr.msk.bf16.vlgmr.msra.gmra.mxu1 %vm1163_vm8, %v3407_v16  ;;  %p2198_p5 = pnand (%p211_p0), %p2197_p4, %p2191_p1 }
 0x20b   : > { %v777_v49 = vsel %vm206_vm0, %v775_v33, -1e+30  ;;  %2059 = vmatpush3.bf16.msra.mxu1 %v1946_v6  ;;  %2062 = vmatprep.mubr.msk.bf16.mxu1 %vm2259_vm1, %v3795_v19 }
 0x20c   : > { %v779_v45 = vsel %vm778_vm6, %v777_v49, -inf  ;;  %2060 = vmatprep.subr.bf16.mxu1 %v3795_v19 }
 0x20d   : > { %780 = vmax.xlane.f32.xlu1 %v779_v45 }
 0x20f   : > { %2061 = vmatpush3.bf16.msra.mxu1 %v1945_v21 }
 0x210   : > { %2072 = vmatprep.subr.bf16.mxu1 %v3795_v19 }
 0x296   : > { %v781_v55 = vpop.xlane.xlu1 %780 }
 0x297   : > { %v782_v35 = vsub.f32 %v777_v49, %v781_v55  ;;  %v3804_v49 = vld [vmem:[#allocation25_spill] sm:$0xff] }
 0x299   : > { %v783_v44 = vmul.f32 1.442695, %v782_v35  ;;  %v3805_v35 = vld [vmem:[#allocation28_spill] sm:$0xff] }
 0x29b   : > { %2166 = vpow2.f32 %v783_v44 }
 0x2a8   : > { %v2167_v27 = vpop.eup %2166 }
 0x2a9   : > { %v785_v34 = vsel %vm778_vm6, %v2167_v27, 0.0 }
 0x2aa   : > { %786 = vadd.xlane.f32.xlu1 %v785_v34  ;;  %v3806_v34 = vld [vmem:[#allocation27_spill] sm:$0xff] }
 0x2c2   : > { %v3394_v23 = vpop.f32.mrf.mxu1 }
 0x333   : > { %v787_v24 = vpop.xlane.xlu1 %786 }
 0x334   : > { %2168 = vrcp.f32 %v787_v24 }
 0x341   : > { %v2169_v14 = vpop.eup %2168 }
 0x342   : > { %v3388_v2 = vmul.f32 %v2169_v14, %v2167_v27 }
 0x344   : > { %v793_v12 = vrot.slane %v3388_v2, %v3049_v26  ;;  %v860_v47 = vrot.slane %v3388_v2, %v859_v50  ;;  %v2034_v26 = vpop.f32.mrf.mxu1 }
 0x346   : > { %799 = vbcast.lane.b32.xlu0 %v793_v12, 264  ;;  %795 = vbcast.lane.b32.xlu1 %v793_v12, 256  ;;  %v1085_v42 = vpop.f32.mrf.mxu1 }
 0x348   : > { %v2035_v54 = vpop.f32.mrf.mxu1 }
 0x349   : > { %v3807_v54 = vld [vmem:[#allocation29_spill] sm:$0xff] }
 0x34a   : > { %874 = vbcast.lane.b32.xlu0 %v860_v47, 280  ;;  %862 = vbcast.lane.b32.xlu1 %v860_v47, 256 }
 0x34e   : > { %878 = vbcast.lane.b32.xlu0 %v860_v47, 288  ;;  %866 = vbcast.lane.b32.xlu1 %v860_v47, 264 }
 0x352   : > { %882 = vbcast.lane.b32.xlu0 %v860_v47, 296  ;;  %803 = vbcast.lane.b32.xlu1 %v793_v12, 272 }
 0x356   : > { %886 = vbcast.lane.b32.xlu0 %v860_v47, 304  ;;  %870 = vbcast.lane.b32.xlu1 %v860_v47, 272 }
 0x35a   : > { %890 = vbcast.lane.b32.xlu0 %v860_v47, 312  ;;  %807 = vbcast.lane.b32.xlu1 %v793_v12, 280 }
 0x35e   : > { %894 = vbcast.lane.b32.xlu0 %v860_v47, 320  ;;  %811 = vbcast.lane.b32.xlu1 %v793_v12, 288 }
 0x362   : > { %898 = vbcast.lane.b32.xlu0 %v860_v47, 328  ;;  %815 = vbcast.lane.b32.xlu1 %v793_v12, 296 }
 0x366   : > { %902 = vbcast.lane.b32.xlu0 %v860_v47, 336  ;;  %819 = vbcast.lane.b32.xlu1 %v793_v12, 304 }
 0x36a   : > { %906 = vbcast.lane.b32.xlu0 %v860_v47, 344  ;;  %823 = vbcast.lane.b32.xlu1 %v793_v12, 312 }
 0x36e   : > { %910 = vbcast.lane.b32.xlu0 %v860_v47, 352  ;;  %827 = vbcast.lane.b32.xlu1 %v793_v12, 320 }
 0x372   : > { %914 = vbcast.lane.b32.xlu0 %v860_v47, 360  ;;  %831 = vbcast.lane.b32.xlu1 %v793_v12, 328 }
 0x376   : > { %918 = vbcast.lane.b32.xlu0 %v860_v47, 368  ;;  %835 = vbcast.lane.b32.xlu1 %v793_v12, 336 }
 0x37a   : > { %922 = vbcast.lane.b32.xlu0 %v860_v47, 376  ;;  %839 = vbcast.lane.b32.xlu1 %v793_v12, 344 }
 0x37e   : > { %843 = vbcast.lane.b32.xlu1 %v793_v12, 352 }
 0x382   : > { %847 = vbcast.lane.b32.xlu1 %v793_v12, 360 }
 0x386   : > { %851 = vbcast.lane.b32.xlu1 %v793_v12, 368 }
 0x38a   : > { %855 = vbcast.lane.b32.xlu1 %v793_v12, 376 }
 0x38e   : > { %1831 = vperm.xlu1 %2165, %v1829_v48  }
 0x3b8   : > { %v800_v52 = vpop.permute.xlu0 %799  ;;  %v796_v37 = vpop.permute.xlu1 %795 }
 0x3bc   : > { %v875_v22 = vpop.permute.xlu0 %874  ;;  %v863_v15 = vpop.permute.xlu1 %862 }
 0x3bd   : > { %v940_v45 = vmul.f32 %v863_v15, %v3804_v49  ;;  %v943_v44 = vmul.f32 %v875_v22, %v3805_v35 }
 0x3bf   : > { %v993_v27 = vsel %vm236_vm2, %v940_v45, 0.0  ;;  %v998_v42 = vsel %vm236_vm2, %v943_v44, 0.0  ;;  %v3811_v45 = vld [vmem:[#allocation10_spill] sm:$0xff] }
 0x3c0   : > { %v879_v40 = vpop.permute.xlu0 %878  ;;  %v867_v8 = vpop.permute.xlu1 %866 }
 0x3c1   : > { %v941_v39 = vmul.f32 %v867_v8, %v3803_v41  ;;  %v944_v36 = vmul.f32 %v879_v40, %v3807_v54  ;;  %v3810_v40 = vld [vmem:[#allocation32_spill] sm:$0xff] }
 0x3c3   : > { %v994_v51 = vsel %vm236_vm2, %v941_v39, 0.0  ;;  %v1000_v29 = vsel %vm236_vm2, %v944_v36, 0.0  ;;  %v3815_v36 = vld [vmem:[#allocation12_spill] sm:$0xff] }
 0x3c4   : > { %v883_v38 = vpop.permute.xlu0 %882  ;;  %v804_v33 = vpop.permute.xlu1 %803  ;;  %v995_v14 = vadd.f32 %v994_v51, %v993_v27  ;;  %v925_v51 = vmul.f32 %v800_v52, %v3811_v45 }
 0x3c5   : > { %v945_v6 = vmul.f32 %v883_v38, %v3808_v53  ;;  %v3812_v38 = vld [vmem:[#allocation9_spill] sm:$0xff] }
 0x3c6   : > { %v924_v44 = vmul.f32 %v796_v37, %v3812_v38 }
 0x3c7   : > { %v1002_v3 = vsel %vm236_vm2, %v945_v6, 0.0  ;;  %v3817_v6 = vld [vmem:[#allocation72_spill] sm:$0xff] }
 0x3c8   : > { %v887_v4 = vpop.permute.xlu0 %886  ;;  %v871_v55 = vpop.permute.xlu1 %870 }
 0x3c9   : > { %v942_v24 = vmul.f32 %v871_v55, %v3806_v34  ;;  %v946_v21 = vmul.f32 %v887_v4, %v3809_v18  ;;  %v3813_v34 = vld [vmem:[#allocation33_spill] sm:$0xff]  ;;  %v3814_v4 = vld [vmem:[#allocation11_spill] sm:$0xff] }
 0x3ca   : > { %v3819_v18 = vld [vmem:[#allocation35_spill] sm:$0xff] }
 0x3cb   : > { %v996_v50 = vsel %vm236_vm2, %v942_v24, 0.0  ;;  %v1004_v41 = vsel %vm236_vm2, %v946_v21, 0.0 }
 0x3cc   : > { %v997_v12 = vadd.f32 %v996_v50, %v995_v14  ;;  %v891_v47 = vpop.permute.xlu0 %890  ;;  %v808_v26 = vpop.permute.xlu1 %807  ;;  %v926_v50 = vmul.f32 %v804_v33, %v3814_v4 }
 0x3cd   : > { %v947_v39 = vmul.f32 %v891_v47, %v3810_v40  ;;  %v956_v47 = vsel %vm236_vm2, %v924_v44, 0.0 }
 0x3ce   : > { %v999_v46 = vadd.f32 %v998_v42, %v997_v12  ;;  %v957_v12 = vsel %vm236_vm2, %v925_v51, 0.0 }
 0x3cf   : > { %v1006_v27 = vsel %vm236_vm2, %v947_v39, 0.0 }
 0x3d0   : > { %v895_v48 = vpop.permute.xlu0 %894  ;;  %v812_v20 = vpop.permute.xlu1 %811  ;;  %v1001_v43 = vadd.f32 %v1000_v29, %v999_v46  ;;  %v927_v46 = vmul.f32 %v808_v26, %v3815_v36  ;;  %v3816_v29 = vld [vmem:[#allocation34_spill] sm:$0xff]  ;;  %v3824_v36 = vld [vmem:[#allocation16_spill] sm:$0xff] }
 0x3d1   : > { %v948_v24 = vmul.f32 %v895_v48, %v3813_v34  ;;  %v959_v48 = vsel %vm236_vm2, %v926_v50, 0.0  ;;  %v3822_v34 = vld [vmem:[#allocation15_spill] sm:$0xff] }
 0x3d2   : > { %v1003_v22 = vadd.f32 %v1002_v3, %v1001_v43  ;;  %v1083_v43 = vadd.f32 %v3817_v6, %v3394_v23  ;;  %v3818_v3 = vld [vmem:[#allocation13_spill] sm:$0xff]  ;;  %v961_v39 = vsel %vm236_vm2, %v927_v46, 0.0  ;;  %v3825_v46 = vld [vmem:[#allocation38_spill] sm:$0xff] }
 0x3d3   : > { %v1008_v52 = vsel %vm236_vm2, %v948_v24, 0.0  ;;  %v928_v33 = vmul.f32 %v812_v20, %v3818_v3  ;;  %v3823_v24 = vld [vmem:[#allocation37_spill] sm:$0xff] }
 0x3d4   : > { %v899_v25 = vpop.permute.xlu0 %898  ;;  %v816_v0 = vpop.permute.xlu1 %815  ;;  %v1005_v49 = vadd.f32 %v1004_v41, %v1003_v22  ;;  %v958_v22 = vadd.f32 %v957_v12, %v956_v47  ;;  %v1934_v23 = vmul.f32 -1.442695, %v1083_v43  ;;  %v3826_v6 = vld [vmem:[#allocation17_spill] sm:$0xff]  ;;  %v3827_v43 = vld [vmem:[#allocation39_spill] sm:$0xff] }
 0x3d5   : > { %v949_v53 = vmul.f32 %v899_v25, %v3816_v29  ;;  %v3821_v25 = vld [vmem:[#allocation36_spill] sm:$0xff] }
 0x3d6   : > { %v1007_v14 = vadd.f32 %v1006_v27, %v1005_v49  ;;  %v3820_v49 = vld [vmem:[#allocation14_spill] sm:$0xff]  ;;  %v960_v38 = vadd.f32 %v959_v48, %v958_v22  ;;  %v963_v27 = vsel %vm236_vm2, %v928_v33, 0.0  ;;  %2170 = vpow2.f32 %v1934_v23 }
 0x3d7   : > { %v1010_v26 = vsel %vm236_vm2, %v949_v53, 0.0  ;;  %v929_v45 = vmul.f32 %v816_v0, %v3820_v49 }
 0x3d8   : > { %v903_v15 = vpop.permute.xlu0 %902  ;;  %v820_v8 = vpop.permute.xlu1 %819  ;;  %v1009_v37 = vadd.f32 %v1008_v52, %v1007_v14  ;;  %v962_v4 = vadd.f32 %v961_v39, %v960_v38  ;;  %v3830_v38 = vld [vmem:[#allocation19_spill] sm:$0xff] }
 0x3d9   : > { %v950_v21 = vmul.f32 %v903_v15, %v3819_v18  ;;  %v930_v15 = vmul.f32 %v820_v8, %v3822_v34  ;;  %v965_v47 = vsel %vm236_vm2, %v929_v45, 0.0 }
 0x3da   : > { %v1011_v44 = vadd.f32 %v1010_v26, %v1009_v37  ;;  %v964_v29 = vadd.f32 %v963_v27, %v962_v4  ;;  %v3829_v26 = vld [vmem:[#allocation40_spill] sm:$0xff] }
 0x3db   : > { %v1012_v20 = vsel %vm236_vm2, %v950_v21, 0.0  ;;  %v967_v37 = vsel %vm236_vm2, %v930_v15, 0.0 }
 0x3dc   : > { %v907_v55 = vpop.permute.xlu0 %906  ;;  %v824_v35 = vpop.permute.xlu1 %823  ;;  %v1013_v53 = vadd.f32 %v1012_v20, %v1011_v44  ;;  %v966_v3 = vadd.f32 %v965_v47, %v964_v29  ;;  %v3832_v47 = vld [vmem:[#allocation21_spill] sm:$0xff] }
 0x3dd   : > { %v951_v51 = vmul.f32 %v907_v55, %v3821_v25  ;;  %v931_v55 = vmul.f32 %v824_v35, %v3824_v36 }
 0x3de   : > { %v968_v45 = vadd.f32 %v967_v37, %v966_v3  ;;  %v3834_v3 = vld [vmem:[#allocation23_spill] sm:$0xff] }
 0x3df   : > { %v1014_v0 = vsel %vm236_vm2, %v951_v51, 0.0  ;;  %v969_v22 = vsel %vm236_vm2, %v931_v55, 0.0 }
 0x3e0   : > { %v911_v42 = vpop.permute.xlu0 %910  ;;  %v828_v54 = vpop.permute.xlu1 %827  ;;  %v1015_v33 = vadd.f32 %v1014_v0, %v1013_v53  ;;  %v970_v23 = vadd.f32 %v969_v22, %v968_v45 }
 0x3e1   : > { %v952_v14 = vmul.f32 %v911_v42, %v3823_v24  ;;  %v932_v42 = vmul.f32 %v828_v54, %v3826_v6  ;;  %v3831_v24 = vld [vmem:[#allocation20_spill] sm:$0xff] }
 0x3e3   : > { %v1016_v8 = vsel %vm236_vm2, %v952_v14, 0.0  ;;  %v971_v51 = vsel %vm236_vm2, %v932_v42, 0.0  ;;  %v2171_v37 = vpop.eup %2170 }
 0x3e4   : > { %v915_v41 = vpop.permute.xlu0 %914  ;;  %v832_v40 = vpop.permute.xlu1 %831  ;;  %v1017_v25 = vadd.f32 %v1016_v8, %v1015_v33 }
 0x3e5   : > { %v953_v52 = vmul.f32 %v915_v41, %v3825_v46  ;;  %v3828_v41 = vld [vmem:[#allocation18_spill] sm:$0xff] }
 0x3e6   : > { %v933_v39 = vmul.f32 %v832_v40, %v3828_v41  ;;  %v972_v40 = vadd.f32 %v971_v51, %v970_v23 }
 0x3e7   : > { %v1018_v35 = vsel %vm236_vm2, %v953_v52, 0.0  ;;  %v3833_v52 = vld [vmem:[#allocation22_spill] sm:$0xff] }
 0x3e8   : > { %v919_v50 = vpop.permute.xlu0 %918  ;;  %v836_v12 = vpop.permute.xlu1 %835  ;;  %v1019_v27 = vadd.f32 %v1018_v35, %v1017_v25  ;;  %v973_v34 = vsel %vm236_vm2, %v933_v39, 0.0 }
 0x3e9   : > { %v954_v48 = vmul.f32 %v919_v50, %v3827_v43  ;;  %v934_v44 = vmul.f32 %v836_v12, %v3830_v38  ;;  %v974_v36 = vadd.f32 %v973_v34, %v972_v40 }
 0x3eb   : > { %v1020_v54 = vsel %vm236_vm2, %v954_v48, 0.0  ;;  %v975_v50 = vsel %vm236_vm2, %v934_v44, 0.0 }
 0x3ec   : > { %v923_v18 = vpop.permute.xlu0 %922  ;;  %v840_v21 = vpop.permute.xlu1 %839  ;;  %v1021_v4 = vadd.f32 %v1020_v54, %v1019_v27  ;;  %v976_v53 = vadd.f32 %v975_v50, %v974_v36  ;;  %v3836_v36 = vld [vmem:[#allocation100_spill] sm:$0xff] }
 0x3ed   : > { %v955_v49 = vmul.f32 %v923_v18, %v3829_v26  ;;  %v935_v14 = vmul.f32 %v840_v21, %v3831_v24  ;;  %v1091_v21 = vadd.f32 1.0, %v2171_v37  ;;  %v3835_v26 = vld [vmem:[#allocation24_spill] sm:$0xff]  ;;  %v3841_v37 = vld [vmem:[#allocation97_spill] sm:$0xff] }
 0x3ef   : > { %v1022_v15 = vsel %vm236_vm2, %v955_v49, 0.0  ;;  %v977_v12 = vsel %vm236_vm2, %v935_v14, 0.0  ;;  %2172 = vrcp.f32 %v1091_v21  ;;  %v3847_v21 = vld [vmem:[#allocation80_spill] sm:$0xff] }
 0x3f0   : > { %v844_v20 = vpop.permute.xlu1 %843  ;;  %v1023_v55 = vadd.f32 %v1022_v15, %v1021_v4  ;;  %v978_v42 = vadd.f32 %v977_v12, %v976_v53  ;;  %v3838_v12 = vld [vmem:[#allocation104_spill] sm:$0xff] }
 0x3f1   : > { %v936_v0 = vmul.f32 %v844_v20, %v3832_v47 }
 0x3f2   : > { %v1024_v6 = vrot.slane %v1023_v55, 4 }
 0x3f3   : > { %v979_v8 = vsel %vm236_vm2, %v936_v0, 0.0 }
 0x3f4   : > { %v848_v46 = vpop.permute.xlu1 %847  ;;  %v980_v18 = vadd.f32 %v979_v8, %v978_v42  ;;  %v1025_v35 = vadd.f32 %v1024_v6, %v1023_v55  ;;  %v3837_v55 = vld [vmem:[#allocation99_spill] sm:$0xff]  ;;  %v3842_v6 = vld [vmem:[#allocation102_spill] sm:$0xff]  ;;  %v3843_v42 = vld [vmem:[#allocation101_spill] sm:$0xff] }
 0x3f5   : > { %v937_v29 = vmul.f32 %v848_v46, %v3833_v52  ;;  %v1941_v46 = vcombine.low %v3837_v55, %v3836_v36  ;;  %v3839_v52 = vld [vmem:[#allocation103_spill] sm:$0xff]  ;;  %v3863_v36 = vld [vmem:[#allocation109_spill] sm:$0xff] }
 0x3f6   : > { %v1026_v51 = vrot.slane %v1025_v35, 2 }
 0x3f7   : > { %v981_v48 = vsel %vm236_vm2, %v937_v29, 0.0  ;;  %v1951_v29 = vcombine.low %v3839_v52, %v3838_v12  ;;  %v3865_v12 = vld [vmem:[#allocation82_spill] sm:$0xff] }
 0x3f8   : > { %v852_v43 = vpop.permute.xlu1 %851  ;;  %v982_v41 = vadd.f32 %v981_v48, %v980_v18  ;;  %v1027_v44 = vadd.f32 %v1026_v51, %v1025_v35  ;;  %v3844_v48 = vld [vmem:[#allocation79_spill] sm:$0xff]  ;;  %v3846_v18 = vld [vmem:[#allocation81_spill] sm:$0xff]  ;;  %v3848_v35 = vld [vmem:[#allocation92_spill] sm:$0xff] }
 0x3f9   : > { %v938_v33 = vmul.f32 %v852_v43, %v3834_v3  ;;  %v1950_v43 = vcombine.low %v3843_v42, %v3842_v6  ;;  %v3845_v3 = vld [vmem:[#allocation78_spill] sm:$0xff]  ;;  %v3853_v51 = vld [vmem:[#allocation89_spill] sm:$0xff]  ;;  %v3867_v6 = vld [vmem:[#allocation75_spill] sm:$0xff] }
 0x3fa   : > { %v1028_v20 = vrot.slane %v1027_v44, 1 }
 0x3fb   : > { %v983_v22 = vsel %vm236_vm2, %v938_v33, 0.0  ;;  %v1948_v33 = vcombine.low %v3845_v3, %v3844_v48 }
 0x3fc   : > { %v856_v39 = vpop.permute.xlu1 %855  ;;  %v984_v45 = vadd.f32 %v983_v22, %v982_v41  ;;  %v2173_v40 = vpop.eup %2172  ;;  %v1029_v4 = vadd.f32 %v1028_v20, %v1027_v44  ;;  %v1958_v22 = vcombine.low %v3847_v21, %v3846_v18  ;;  %v3849_v41 = vld [vmem:[#allocation91_spill] sm:$0xff]  ;;  %v3855_v44 = vld [vmem:[#allocation93_spill] sm:$0xff] }
 0x3fd   : > { %v939_v49 = vmul.f32 %v856_v39, %v3835_v26  ;;  %v1956_v39 = vcombine.low %v3849_v41, %v3848_v35  ;;  %v3850_v26 = vld [vmem:[#allocation96_spill] sm:$0xff]  ;;  %v3857_v20 = vld [vmem:[#allocation107_spill] sm:$0xff] }
 0x3ff   : > { %v985_v25 = vsel %vm236_vm2, %v939_v49, 0.0  ;;  %v3851_v49 = vld [vmem:[#allocation95_spill] sm:$0xff] }
 0x400   : > { %v986_v54 = vadd.f32 %v985_v25, %v984_v45  ;;  %v1965_v45 = vcombine.low %v3851_v49, %v3850_v26  ;;  %v3852_v25 = vld [vmem:[#allocation90_spill] sm:$0xff] }
 0x402   : > { %v987_v38 = vrot.slane %v986_v54, 4 }
 0x404   : > { %v988_v23 = vadd.f32 %v987_v38, %v986_v54  ;;  %v1955_v54 = vcombine.low %v3853_v51, %v3852_v25  ;;  %v3854_v38 = vld [vmem:[#allocation94_spill] sm:$0xff] }
 0x406   : > { %v989_v27 = vrot.slane %v988_v23, 2 }
 0x408   : > { %v990_v34 = vadd.f32 %v989_v27, %v988_v23  ;;  %v1964_v23 = vcombine.low %v3855_v44, %v3854_v38  ;;  %v3856_v27 = vld [vmem:[#allocation108_spill] sm:$0xff] }
 0x409   : > { %v3491_v15 = vpop.permute.xlu1 %1831 }
 0x40a   : > { %v991_v24 = vrot.slane %v990_v34, 1  ;;  %vm1833_vm9 = vcmp.eq.s32.totalorder %v3491_v15, 1 }
 0x40b   : > { %v1838_v14 = vsel %vm1833_vm9, %v3388_v2, 0.0  ;;  %v3840_v2 = vld [vmem:[#allocation98_spill] sm:$0xff] }
 0x40c   : > { %v992_v50 = vadd.f32 %v991_v24, %v990_v34  ;;  %1840 = vst [vmem:[%s1839_s23] sm:$0x3] %v1838_v14  ;;  %v1940_v8 = vcombine.low %v3841_v37, %v3840_v2  ;;  %v1961_v34 = vcombine.low %v3857_v20, %v3856_v27  ;;  %v3858_v24 = vld [vmem:[#allocation112_spill] sm:$0xff]  ;;  %v3859_v14 = vld [vmem:[#allocation111_spill] sm:$0xff] }
 0x40e   : > { %v1096_v47 = vsel %vm774_vm5, %v1029_v4, %v992_v50  ;;  %v3860_v4 = vld [vmem:[#allocation106_spill] sm:$0xff]  ;;  %v3861_v50 = vld [vmem:[#allocation105_spill] sm:$0xff] }
 0x40f   : > { %v1098_v0 = vmul.f32 %v2173_v40, %v1096_v47  ;;  %v1970_v40 = vcombine.low %v3859_v14, %v3858_v24  ;;  %v1960_v47 = vcombine.low %v3861_v50, %v3860_v4 }
 0x411   : > { %v1101_v53 = vpack.c.bf16 %v1098_v0, %v1098_v0  ;;  %v3862_v0 = vld [vmem:[#allocation110_spill] sm:$0xff] }
 0x412   : > { %v1969_v55 = vcombine.low %v3863_v36, %v3862_v0  ;;  %v3871_v36 = vld [vmem:[#allocation114_spill] sm:$0xff] }
 0x413   : > { %2041 = vmatmul.mubr.msk.bf16.vlgmr.msra.gmra.mxu0 %vm236_vm2, %v1101_v53  ;;  %2063 = vmatmul.mubr.msk.bf16.vlgmr.msra.gmra.mxu1 %vm236_vm2, %v1101_v53 }
 0x414   : > { %2051 = vmatpush3.bf16.msra.mxu0 %v1941_v46  ;;  %2073 = vmatpush3.bf16.msra.mxu1 %v1951_v29  ;;  %v3864_v46 = vld [vmem:[#allocation83_spill] sm:$0xff]  ;;  %v1201_v29 = vpop.f32.mrf.mxu1 }
 0x415   : > { %2052 = vmatprep.subr.bf16.mxu0 %v3795_v19  ;;  %2074 = vmatprep.subr.bf16.mxu1 %v3795_v19  ;;  %v1967_v52 = vcombine.low %v3865_v12, %v3864_v46 }
 0x416   : > { %2054 = vmatprep.mubr.msk.bf16.mxu0 %vm2259_vm1, %v3795_v19  ;;  %2076 = vmatprep.mubr.msk.bf16.mxu1 %vm2259_vm1, %v3795_v19 }
 0x418   : > { %2053 = vmatpush3.bf16.msra.mxu0 %v1940_v8  ;;  %2075 = vmatpush3.bf16.msra.mxu1 %v1950_v43  ;;  %v3866_v8 = vld [vmem:[#allocation76_spill] sm:$0xff]  ;;  %v3869_v43 = vld [vmem:[#allocation73_spill] sm:$0xff] }
 0x419   : > { %2066 = vmatprep.subr.bf16.mxu0 %v3795_v19  ;;  %2088 = vmatprep.subr.bf16.mxu1 %v3795_v19  ;;  %v1976_v42 = vcombine.low %v3867_v6, %v3866_v8 }
 0x41b   : > { %2055 = vmatmul.mubr.msk.bf16.vlgmr.msra.gmra.mxu0 %vm236_vm2, %v3034_v13  ;;  %2077 = vmatmul.mubr.msk.bf16.vlgmr.msra.gmra.mxu1 %vm236_vm2, %v3034_v13 }
 0x41c   : > { %2067 = vmatpush3.bf16.msra.mxu0 %v1948_v33  ;;  %2089 = vmatpush3.bf16.msra.mxu1 %v1958_v22 }
 0x41d   : > { %2068 = vmatprep.mubr.msk.bf16.mxu0 %vm2259_vm1, %v3795_v19  ;;  %2080 = vmatprep.subr.bf16.mxu0 %v3795_v19 }
 0x41e   : > { %2090 = vmatprep.mubr.msk.bf16.mxu1 %vm2259_vm1, %v3795_v19  ;;  %2102 = vmatprep.subr.bf16.mxu1 %v3795_v19 }
 0x423   : > { %2069 = vmatmul.mubr.msk.bf16.vlgmr.msra.gmra.mxu0 %vm1163_vm8, %v3407_v16  ;;  %2091 = vmatmul.mubr.msk.bf16.vlgmr.msra.gmra.mxu1 %vm1163_vm8, %v3407_v16 }
 0x424   : > { %2081 = vmatpush3.bf16.msra.mxu0 %v1956_v39  ;;  %2103 = vmatpush3.bf16.msra.mxu1 %v1965_v45 }
 0x425   : > { %2082 = vmatprep.subr.bf16.mxu0 %v3795_v19  ;;  %2104 = vmatprep.subr.bf16.mxu1 %v3795_v19 }
 0x426   : > { %2084 = vmatprep.mubr.msk.bf16.mxu0 %vm2259_vm1, %v3795_v19  ;;  %2106 = vmatprep.mubr.msk.bf16.mxu1 %vm2259_vm1, %v3795_v19 }
 0x428   : > { %2083 = vmatpush3.bf16.msra.mxu0 %v1955_v54  ;;  %2105 = vmatpush3.bf16.msra.mxu1 %v1964_v23  ;;  %v3870_v54 = vld [vmem:[#allocation113_spill] sm:$0xff] }
 0x429   : > { %2094 = vmatprep.subr.bf16.mxu0 %v3795_v19  ;;  %2116 = vmatprep.subr.bf16.mxu1 %v3795_v19 }
 0x42b   : > { %2085 = vmatmul.mubr.msk.bf16.vlgmr.msra.gmra.mxu0 %vm236_vm2, %v1101_v53  ;;  %2107 = vmatmul.mubr.msk.bf16.vlgmr.msra.gmra.mxu1 %vm236_vm2, %v1101_v53  ;;  %v2048_v53 = vpop.f32.mrf.mxu1 }
 0x42c   : > { %2095 = vmatpush3.bf16.msra.mxu0 %v1961_v34  ;;  %2117 = vmatpush3.bf16.msra.mxu1 %v1970_v40 }
 0x42d   : > { %2096 = vmatprep.subr.bf16.mxu0 %v3795_v19  ;;  %2098 = vmatprep.mubr.msk.bf16.mxu0 %vm2259_vm1, %v3795_v19  ;;  %v1204_v2 = vpop.f32.mrf.mxu1 }
 0x42e   : > { %2118 = vmatprep.subr.bf16.mxu1 %v3795_v19  ;;  %2120 = vmatprep.mubr.msk.bf16.mxu1 %vm2259_vm1, %v3795_v19 }
 0x42f   : > { %v2049_v37 = vpop.f32.mrf.mxu1 }
 0x430   : > { %2097 = vmatpush3.bf16.msra.mxu0 %v1960_v47  ;;  %2119 = vmatpush3.bf16.msra.mxu1 %v1969_v55 }
 0x431   : > { %2110 = vmatprep.subr.bf16.mxu0 %v3795_v19 }
 0x433   : > { %2099 = vmatmul.mubr.msk.bf16.vlgmr.msra.gmra.mxu0 %vm236_vm2, %v3034_v13  ;;  %2121 = vmatmul.mubr.msk.bf16.vlgmr.msra.gmra.mxu1 %vm236_vm2, %v3034_v13  ;;  %v3868_v13 = vld [vmem:[#allocation74_spill] sm:$0xff] }
 0x434   : > { %2111 = vmatpush3.bf16.msra.mxu0 %v1967_v52  ;;  %2112 = vmatprep.mubr.msk.bf16.mxu0 %vm2259_vm1, %v3795_v19  ;;  %v1975_v48 = vcombine.low %v3869_v43, %v3868_v13 }
 0x435   : > { %2124 = vmatprep.subr.bf16.mxu0 %v3795_v19 }
 0x43b   : > { %2113 = vmatmul.mubr.msk.bf16.vlgmr.msra.gmra.mxu0 %vm1163_vm8, %v3407_v16 }
 0x43c   : > { %2128 = vmatprep.mubr.msk.bf16.mxu0 %vm2259_vm1, %v3795_v19  ;;  %2125 = vmatpush3.bf16.msra.mxu0 %v1976_v42 }
 0x43d   : > { %2126 = vmatprep.subr.bf16.mxu0 %v3795_v19 }
 0x440   : > { %2127 = vmatpush3.bf16.msra.mxu0 %v1975_v48 }
 0x4d3   : > { %v1151_v3 = vpop.f32.mrf.mxu0  ;;  %v1319_v33 = vpop.f32.mrf.mxu1 }
 0x4d4   : > { %v1202_v39 = vadd.f32 %v1201_v29, %v1151_v3 }
 0x4d5   : > { %v2042_v16 = vpop.f32.mrf.mxu0  ;;  %v2064_v18 = vpop.f32.mrf.mxu1 }
 0x4d7   : > { %v1154_v21 = vpop.f32.mrf.mxu0  ;;  %v1322_v22 = vpop.f32.mrf.mxu1 }
 0x4d8   : > { %v3872_v22 = vld [vmem:[#allocation115_spill] sm:$0xff] }
 0x4d9   : > { %v2043_v35 = vpop.f32.mrf.mxu0  ;;  %v2065_v41 = vpop.f32.mrf.mxu1 }
 0x4db   : > { %v1253_v26 = vpop.f32.mrf.mxu0  ;;  %v1417_v49 = vpop.f32.mrf.mxu1 }
 0x4dc   : > { %v1259_v45 = vadd.f32 %v1253_v26, %v1202_v39 }
 0x4dd   : > { %v2056_v25 = vpop.f32.mrf.mxu0  ;;  %v2078_v51 = vpop.f32.mrf.mxu1 }
 0x4de   : > { %v1266_v38 = vadd.f32 %v3870_v54, %v1259_v45 }
 0x4df   : > { %v1256_v44 = vpop.f32.mrf.mxu0  ;;  %v1420_v23 = vpop.f32.mrf.mxu1 }
 0x4e0   : > { %v1944_v20 = vmul.f32 -1.442695, %v1266_v38 }
 0x4e1   : > { %v2057_v19 = vpop.f32.mrf.mxu0  ;;  %v2079_v27 = vpop.f32.mrf.mxu1 }
 0x4e2   : > { %2174 = vpow2.f32 %v1944_v20  ;;  %v3873_v27 = vld [vmem:[#allocation116_spill] sm:$0xff] }
 0x4e3   : > { %v1365_v34 = vpop.f32.mrf.mxu0  ;;  %v1529_v24 = vpop.f32.mrf.mxu1 }
 0x4e4   : > { %v1366_v14 = vadd.f32 %v1365_v34, %v1319_v33 }
 0x4e5   : > { %v2070_v40 = vpop.f32.mrf.mxu0  ;;  %v2092_v4 = vpop.f32.mrf.mxu1 }
 0x4e6   : > { %v1423_v50 = vadd.f32 %v1417_v49, %v1366_v14 }
 0x4e7   : > { %v1368_v47 = vpop.f32.mrf.mxu0  ;;  %v1532_v0 = vpop.f32.mrf.mxu1 }
 0x4e8   : > { %v1430_v55 = vadd.f32 %v3871_v36, %v1423_v50  ;;  %v3874_v50 = vld [vmem:[#allocation117_spill] sm:$0xff] }
 0x4e9   : > { %v2071_v46 = vpop.f32.mrf.mxu0  ;;  %v2093_v12 = vpop.f32.mrf.mxu1 }
 0x4ea   : > { %v1954_v52 = vmul.f32 -1.442695, %v1430_v55 }
 0x4eb   : > { %v1483_v29 = vpop.f32.mrf.mxu0  ;;  %v1642_v53 = vpop.f32.mrf.mxu1 }
 0x4ec   : > { %2176 = vpow2.f32 %v1954_v52  ;;  %v1530_v43 = vadd.f32 %v1529_v24, %v1483_v29 }
 0x4ed   : > { %v2086_v2 = vpop.f32.mrf.mxu0  ;;  %v2108_v37 = vpop.f32.mrf.mxu1 }
 0x4ee   : > { %v3875_v2 = vld [vmem:[#allocation118_spill] sm:$0xff] }
 0x4ef   : > { %v1486_v8 = vpop.f32.mrf.mxu0  ;;  %v1645_v6 = vpop.f32.mrf.mxu1 }
 0x4f0   : > { %v2175_v33 = vpop.eup %2174  ;;  %v3876_v8 = vld [vmem:[#allocation77_spill] sm:$0xff] }
 0x4f1   : > { %v2087_v42 = vpop.f32.mrf.mxu0  ;;  %v2109_v13 = vpop.f32.mrf.mxu1  ;;  %v1270_v41 = vadd.f32 1.0, %v2175_v33 }
 0x4f3   : > { %v1581_v48 = vpop.f32.mrf.mxu0  ;;  %v1740_v3 = vpop.f32.mrf.mxu1 }
 0x4f4   : > { %v1587_v16 = vadd.f32 %v1581_v48, %v1530_v43 }
 0x4f5   : > { %v2100_v18 = vpop.f32.mrf.mxu0  ;;  %v2122_v21 = vpop.f32.mrf.mxu1 }
 0x4f6   : > { %v1594_v35 = vadd.f32 %v3872_v22, %v1587_v16 }
 0x4f7   : > { %v1584_v39 = vpop.f32.mrf.mxu0  ;;  %v1743_v26 = vpop.f32.mrf.mxu1 }
 0x4f8   : > { %2178 = vtanh.f32 %v1594_v35 }
 0x4f9   : > { %v2177_v49 = vpop.eup %2176  ;;  %v2101_v45 = vpop.f32.mrf.mxu0  ;;  %2180 = vrcp.f32 %v1270_v41 }
 0x4fa   : > { %v2123_v25 = vpop.f32.mrf.mxu1  ;;  %v1434_v51 = vadd.f32 1.0, %v2177_v49 }
 0x4fb   : > { %v1688_v54 = vpop.f32.mrf.mxu0 }
 0x4fc   : > { %2182 = vrcp.f32 %v1434_v51  ;;  %v1689_v38 = vadd.f32 %v1688_v54, %v1642_v53 }
 0x4fd   : > { %v2114_v44 = vpop.f32.mrf.mxu0 }
 0x4fe   : > { %v1746_v23 = vadd.f32 %v1740_v3, %v1689_v38 }
 0x4ff   : > { %v1691_v19 = vpop.f32.mrf.mxu0 }
 0x500   : > { %v1753_v20 = vadd.f32 %v3873_v27, %v1746_v23 }
 0x501   : > { %v2115_v34 = vpop.f32.mrf.mxu0 }
 0x502   : > { %v1973_v24 = vmul.f32 -1.442695, %v1753_v20 }
 0x504   : > { %2184 = vpow2.f32 %v1973_v24 }
 0x505   : > { %v2179_v14 = vpop.eup %2178 }
 0x506   : > { %v2181_v40 = vpop.eup %2180 }
 0x507   : > { %v1761_v0 = vmul.f32 %v2181_v40, %v2179_v14 }
 0x509   : > { %v2183_v4 = vpop.eup %2182 }
 0x50a   : > { %v1760_v47 = vmul.f32 %v3874_v50, %v2183_v4 }
 0x50c   : > { %v1762_v36 = vadd.f32 %v1761_v0, %v1760_v47 }
 0x50e   : > { %v1842_v23 = vsel %vm1833_vm9, %v1762_v36, %v3874_v50   ;;  %2186 = vtanh.f32 %v1762_v36 }
 0x511   : > { %v2185_v55 = vpop.eup %2184 }
 0x512   : > { %v1757_v46 = vadd.f32 1.0, %v2185_v55 }
 0x514   : > { %2188 = vrcp.f32 %v1757_v46 }
 0x51b   : > { %v2187_v12 = vpop.eup %2186 }
 0x521   : > { %v2189_v52 = vpop.eup %2188 }
 0x522   : > { %v1764_v29 = vmul.f32 %v2189_v52, %v2187_v12 }
 0x524   : > { %v1765_v53 = vpack.c.bf16 %v1764_v29, %v1764_v29  ;;  %v1841_v24 = vsel %vm1833_vm9, %v1764_v29, %v3875_v2  }
 0x526   : > { %2129 = vmatmul.mubr.msk.bf16.vlgmr.msra.gmra.mxu0 %vm236_vm2, %v1765_v53 }
 0x5e6   : > { %v1821_v37 = vpop.f32.mrf.mxu0 }
 0x5e7   : > { %v1822_v6 = vadd.f32 %v3876_v8, %v1821_v37 }
 0x5e8   : > { %v2130_v42 = vpop.f32.mrf.mxu0  ;;  %213 = sbr.rel (!%p211_p0) target bundleno = 74 (0x4a), region = 122 }
 0x5e9   : > { %v1834_v13 = vsel %vm1833_vm9, %v1822_v6, 0.0 }
 0x5ea   : > { %1837 = vst [vmem:[%s1836_s11] sm:$0x3] %v1834_v13  ;;  %v1824_v43 = vpop.f32.mrf.mxu0 }
 0x5ec   : > { %v2131_v48 = vpop.f32.mrf.mxu0 }
 0x5ed   :  { %2201 = shalt.err (!%p2198_p5)
}
 0x5ee   :  { %s2263_s3 = smov 32   ;;  %s2264_s26 = smov 2  }
 0x5ef   :  { %1854 = dma.vmem_to_hbm [thread:$0]  %s1849_s25, 160, %s3635_s18, [#allocation4], %s2263_s3, %s2263_s3, %s2264_s26  }
 0x5f0   :  { %s2265_s28 = smov [#allocation5]  }
 0x5f1   :  { %s1860_s16 = sshll.u32 %s2265_s28, 4  ;;  %s1861_s16 = int_to_ptr.vmem [resolvable:$true] %s1860_s16 }
 0x5f2   :  { %s2210_s7 = scalar_lea.vmem %s1861_s16, 160  ;;  %p2215_p7 = scmp.lt.s32.totalorder %s1861_s16, %s1861_s16 }
 0x5f3   :  { %p2211_p6 = scmp.ne.s32.totalorder %s1861_s16, %s2210_s7  ;;  %p2216_p8 = scmp.lt.s32.totalorder %s2210_s7, %s2210_s7 }
 0x5f5   :  { %p2217_p9 = por %p2216_p8, %p2215_p7 }
 0x5f7   :  { %p2218_p10 = pnand %p2217_p9, %p2211_p6 }
 0x5f9   :  { %2221 = shalt.err (!%p2218_p10)
}
 0x5fa   :  { %1866 = dma.vmem_to_hbm [thread:$0]  %s1861_s16, 160, %s3636_s19, [#allocation6], %s2263_s3, %s2263_s3, %s2264_s26  }
 0x5fb   :  { %2242 = dma.done.wait [#allocation4], 160  }
 0x5fc   :  { %2243 = vsyncadd [#allocation4], 4294967136 }
 0x5fd   :  { %2244 = dma.done.wait [#allocation6], 160  }
 0x5fe   :  { %2245 = vsyncadd [#allocation6], 4294967136 }
 0x5ff   :  { %1873 = vsyncpa [#allocation4], 1 }
 0x600   :  { %1874 = vsyncpa [#allocation6], 1 }

</bundles_post_ra>
